<compile_context>
chip_gen: v6e
topology: v6e:2x2x1
jax: 0.10.0
libtpu: 0.0.40
codegen_flags: <defaults>
</compile_context>

<pallas_src>
import math

import jax
import jax.numpy as jnp
from jax.experimental import pallas as pl
from jax.experimental.pallas import tpu as pltpu

EPS = 1e-5
PAD = 128          # lane-dense width for weights, biases, hidden activations


def _make_kernel(batch, dims):
    """dims = (in_dim, h1, h2, h3, h4, h5, out_dim) -- python ints."""
    in_dim, out_dim = dims[0], dims[-1]
    inv_n = [1.0 / float(batch * dims[i + 1]) for i in range(5)]

    def kernel(bn_ref,    # SMEM (10,): gamma[0:5], beta[5:10]
               x_ref,     # VMEM (B, in_dim) true-shape input
               w_hbm,     # HBM  (6, 128, 128) zero-padded (fan_in, fan_out)
               v_ref,     # VMEM (8, 128): rows 0..4 colsum(W2..W6), 5 = b1, 6 = b6
               o_ref,     # VMEM (B, out_dim) output
               wbuf,      # VMEM scratch (6, 128, 128)
               wsem):     # DMA semaphores (6,)
        # Blast-prefetch all six weight tiles; wait per layer just before use.
        copies = [pltpu.make_async_copy(w_hbm.at[i], wbuf.at[i], wsem.at[i])
                  for i in range(6)]
        for cp in copies:
            cp.start()

        # Hoist SMEM scalar reads ahead of the DMA waits.
        gamma = [bn_ref[i] for i in range(5)]
        beta = [bn_ref[5 + i] for i in range(5)]

        def stats(a, i):
            # Single-pass batch stats over the TRUE B*H_i elements (padded
            # lanes of `a` are exact zeros).  One shared cross-lane reduce.
            partials = jnp.concatenate(
                [jnp.sum(a, axis=0, keepdims=True),
                 jnp.sum(a * a, axis=0, keepdims=True)], axis=0)       # (2,128)
            tot = jnp.sum(partials, axis=1, keepdims=True)             # (2,1)
            mu = tot[0:1, :] * inv_n[i]
            var = tot[1:2, :] * inv_n[i] - mu * mu                     # biased
            scale = jax.lax.rsqrt(var + EPS) * gamma[i]                # EUP
            shift = beta[i] - mu * scale
            return scale, shift

        # layer1 (bias) + relu.  Slice the padded weight to the true fan_in.
        copies[0].wait()
        a = jnp.maximum(
            jnp.dot(x_ref[...], wbuf[0][:in_dim, :],
                    preferred_element_type=jnp.float32) + v_ref[5:6, :], 0.0)

        for i in range(5):
            copies[i + 1].wait()
            # BN_i deferred past the next matmul:
            #   bn_i(a) @ W = scale_i*(a @ W) + shift_i*colsum(W)
            # -> the MXU work below does NOT wait on stats(a, i).
            m = jnp.dot(a, wbuf[i + 1], preferred_element_type=jnp.float32)
            scale, shift = stats(a, i)
            pre = scale * m + shift * v_ref[i:i + 1, :]
            if i < 4:
                a = jnp.maximum(pre, 0.0)        # padded lanes stay exact zero
            else:
                # layer6 bias, no activation; emit (B, out_dim) directly.
                o_ref[...] = (pre + v_ref[6:7, :])[:, :out_dim].astype(o_ref.dtype)

    return kernel


def linear_forward(x, params):
    """params: 'w_slab' (6,128,128), 'v_slab' (8,128), 'bn' (10,), 'dims'."""
    B, in_dim = x.shape
    dims = params["dims"]
    assert in_dim == dims[0]
    out_dim = dims[-1]

    flops = 2 * B * sum(dims[i] * dims[i + 1] for i in range(6))
    bytes_accessed = 4 * (B * in_dim + 6 * PAD * PAD + 8 * PAD + 10 + B * out_dim)

    smem = pl.BlockSpec(memory_space=pltpu.MemorySpace.SMEM)
    vmem = pl.BlockSpec(memory_space=pltpu.MemorySpace.VMEM)
    hbm = pl.BlockSpec(memory_space=pl.ANY)

    return pl.pallas_call(
        _make_kernel(B, dims),
        out_shape=jax.ShapeDtypeStruct((B, out_dim), jnp.float32),
        in_specs=[smem, vmem, hbm, vmem],
        out_specs=vmem,
        scratch_shapes=[pltpu.VMEM((6, PAD, PAD), jnp.float32),
                        pltpu.SemaphoreType.DMA((6,))],
        cost_estimate=pl.CostEstimate(flops=flops, transcendentals=5,
                                      bytes_accessed=bytes_accessed),
    )(params["bn"], x.astype(jnp.float32), params["w_slab"], params["v_slab"])


def make_params(in_dim, h1, h2, h3, h4, h5, out_dim, key):
    """Pre-padded, pre-packed parameter slabs (built once, not per call)."""
    dims = (in_dim, h1, h2, h3, h4, h5, out_dim)
    assert max(dims) <= PAD, "this packing assumes all dims <= 128"
    keys = jax.random.split(key, 6)

    w_slab = jnp.zeros((6, PAD, PAD), jnp.float32)
    b1 = jnp.zeros((PAD,), jnp.float32)
    b6 = jnp.zeros((PAD,), jnp.float32)
    for i in range(6):
        fan_in, fan_out = dims[i], dims[i + 1]
        bound = 1.0 / math.sqrt(float(fan_in))       # torch-like uniform init
        kw, kb = jax.random.split(keys[i])
        w = jax.random.uniform(kw, (fan_in, fan_out), jnp.float32, -bound, bound)
        w_slab = w_slab.at[i, :fan_in, :fan_out].set(w)
        if i == 0:
            b1 = b1.at[:fan_out].set(
                jax.random.uniform(kb, (fan_out,), jnp.float32, -bound, bound))
        if i == 5:
            b6 = b6.at[:fan_out].set(
                jax.random.uniform(kb, (fan_out,), jnp.float32, -bound, bound))

    # Deferred-BN fold constants.  The fold relies on padded rows of w_slab
    # being exact zeros (they are by construction via .at[].set into zeros),
    # so the full-slab colsum equals the true colsum.
    colsums = jnp.stack([jnp.sum(w_slab[i], axis=0) for i in range(1, 6)])  # (5,128)
    v_slab = jnp.concatenate(
        [colsums, b1[None, :], b6[None, :], jnp.zeros((1, PAD), jnp.float32)],
        axis=0)                                                             # (8,128)

    bn = jnp.concatenate([jnp.ones((5,), jnp.float32),      # gamma init
                          jnp.zeros((5,), jnp.float32)])    # beta init
    return dict(w_slab=w_slab, v_slab=v_slab, bn=bn, dims=dims)


def _reference(x, p):
    d = p["dims"]
    ws = [p["w_slab"][i, :d[i], :d[i + 1]] for i in range(6)]
    b1 = p["v_slab"][5, :d[1]]
    b6 = p["v_slab"][6, :d[6]]
    gamma, beta = p["bn"][:5], p["bn"][5:]

    def bn(h, i):
        mu = jnp.mean(h)
        var = jnp.mean((h - mu) ** 2)
        return (h - mu) / jnp.sqrt(var + EPS) * gamma[i] + beta[i]

    h = bn(jax.nn.relu(x @ ws[0] + b1), 0)
    for i in range(1, 5):
        h = bn(jax.nn.relu(h @ ws[i]), i)
    return h @ ws[5] + b6


if __name__ == "__main__":
    key = jax.random.PRNGKey(0)
    k_x, k_p = jax.random.split(key)

    B, in_dim = 8, 32
    h1 = h2 = h3 = h4 = h5 = 64
    out_dim = 16

    x = jax.random.normal(k_x, (B, in_dim), jnp.float32)
    params = make_params(in_dim, h1, h2, h3, h4, h5, out_dim, k_p)

    out = linear_forward(x, params)
    jax.block_until_ready(out)

    ref = _reference(x, params)
    assert out.shape == (B, out_dim)
    assert jnp.allclose(out, ref, atol=2e-4, rtol=2e-4), \
        float(jnp.max(jnp.abs(out - ref)))
    print("KERNEL_OK")
</pallas_src>

<mosaic_0001>
module attributes {stable_mosaic.version = 11 : i64} {
  func.func @kernel(%arg0: memref<10xf32, #tpu.memory_space<smem>>, %arg1: memref<8x32xf32, #tpu.memory_space<vmem>>, %arg2: memref<6x128x128xf32, #tpu.memory_space<any>>, %arg3: memref<8x128xf32, #tpu.memory_space<vmem>>, %arg4: memref<8x16xf32, #tpu.memory_space<vmem>>, %arg5: memref<6x128x128xf32, #tpu.memory_space<vmem>>, %arg6: memref<6x!tpu.dma_semaphore, #tpu.memory_space<semaphore_mem>>) attributes {dimension_semantics = [], scalar_prefetch = 0 : i64, scratch_operands = 2 : i64, tpu.core_type = #tpu.core_type<tc>} {
    %c0_i32 = arith.constant 0 : i32
    %c0_i32_0 = arith.constant 0 : i32
    %c0_i32_1 = arith.constant 0 : i32
    %c0_i32_2 = arith.constant 0 : i32
    %c0_i32_3 = arith.constant 0 : i32
    %0 = tpu.memref_slice %arg2[%c0_i32, %c0_i32_2, %c0_i32_3] : memref<6x128x128xf32, #tpu.memory_space<any>> -> memref<1x128x128xf32, #tpu.memory_space<any>>
    %1 = tpu.memref_squeeze %0 : memref<1x128x128xf32, #tpu.memory_space<any>> -> memref<128x128xf32, #tpu.memory_space<any>>
    %c0_i32_4 = arith.constant 0 : i32
    %c0_i32_5 = arith.constant 0 : i32
    %2 = tpu.memref_slice %arg5[%c0_i32_0, %c0_i32_4, %c0_i32_5] : memref<6x128x128xf32, #tpu.memory_space<vmem>> -> memref<1x128x128xf32, #tpu.memory_space<vmem>>
    %3 = tpu.memref_squeeze %2 : memref<1x128x128xf32, #tpu.memory_space<vmem>> -> memref<128x128xf32, #tpu.memory_space<vmem>>
    %4 = tpu.memref_slice %arg6[%c0_i32_1] : memref<6x!tpu.dma_semaphore, #tpu.memory_space<semaphore_mem>> -> memref<1x!tpu.dma_semaphore, #tpu.memory_space<semaphore_mem>>
    %5 = tpu.memref_squeeze %4 : memref<1x!tpu.dma_semaphore, #tpu.memory_space<semaphore_mem>> -> memref<!tpu.dma_semaphore, #tpu.memory_space<semaphore_mem>>
    tpu.enqueue_dma source(%1 : memref<128x128xf32, #tpu.memory_space<any>>) target(%3 : memref<128x128xf32, #tpu.memory_space<vmem>>) target_semaphore(%5 : memref<!tpu.dma_semaphore, #tpu.memory_space<semaphore_mem>>)
    %c1_i32 = arith.constant 1 : i32
    %c1_i32_6 = arith.constant 1 : i32
    %c1_i32_7 = arith.constant 1 : i32
    %c0_i32_8 = arith.constant 0 : i32
    %c0_i32_9 = arith.constant 0 : i32
    %6 = tpu.memref_slice %arg2[%c1_i32, %c0_i32_8, %c0_i32_9] : memref<6x128x128xf32, #tpu.memory_space<any>> -> memref<1x128x128xf32, #tpu.memory_space<any>>
    %7 = tpu.memref_squeeze %6 : memref<1x128x128xf32, #tpu.memory_space<any>> -> memref<128x128xf32, #tpu.memory_space<any>>
    %c0_i32_10 = arith.constant 0 : i32
    %c0_i32_11 = arith.constant 0 : i32
    %8 = tpu.memref_slice %arg5[%c1_i32_6, %c0_i32_10, %c0_i32_11] : memref<6x128x128xf32, #tpu.memory_space<vmem>> -> memref<1x128x128xf32, #tpu.memory_space<vmem>>
    %9 = tpu.memref_squeeze %8 : memref<1x128x128xf32, #tpu.memory_space<vmem>> -> memref<128x128xf32, #tpu.memory_space<vmem>>
    %10 = tpu.memref_slice %arg6[%c1_i32_7] : memref<6x!tpu.dma_semaphore, #tpu.memory_space<semaphore_mem>> -> memref<1x!tpu.dma_semaphore, #tpu.memory_space<semaphore_mem>>
    %11 = tpu.memref_squeeze %10 : memref<1x!tpu.dma_semaphore, #tpu.memory_space<semaphore_mem>> -> memref<!tpu.dma_semaphore, #tpu.memory_space<semaphore_mem>>
    tpu.enqueue_dma source(%7 : memref<128x128xf32, #tpu.memory_space<any>>) target(%9 : memref<128x128xf32, #tpu.memory_space<vmem>>) target_semaphore(%11 : memref<!tpu.dma_semaphore, #tpu.memory_space<semaphore_mem>>)
    %c2_i32 = arith.constant 2 : i32
    %c2_i32_12 = arith.constant 2 : i32
    %c2_i32_13 = arith.constant 2 : i32
    %c0_i32_14 = arith.constant 0 : i32
    %c0_i32_15 = arith.constant 0 : i32
    %12 = tpu.memref_slice %arg2[%c2_i32, %c0_i32_14, %c0_i32_15] : memref<6x128x128xf32, #tpu.memory_space<any>> -> memref<1x128x128xf32, #tpu.memory_space<any>>
    %13 = tpu.memref_squeeze %12 : memref<1x128x128xf32, #tpu.memory_space<any>> -> memref<128x128xf32, #tpu.memory_space<any>>
    %c0_i32_16 = arith.constant 0 : i32
    %c0_i32_17 = arith.constant 0 : i32
    %14 = tpu.memref_slice %arg5[%c2_i32_12, %c0_i32_16, %c0_i32_17] : memref<6x128x128xf32, #tpu.memory_space<vmem>> -> memref<1x128x128xf32, #tpu.memory_space<vmem>>
    %15 = tpu.memref_squeeze %14 : memref<1x128x128xf32, #tpu.memory_space<vmem>> -> memref<128x128xf32, #tpu.memory_space<vmem>>
    %16 = tpu.memref_slice %arg6[%c2_i32_13] : memref<6x!tpu.dma_semaphore, #tpu.memory_space<semaphore_mem>> -> memref<1x!tpu.dma_semaphore, #tpu.memory_space<semaphore_mem>>
    %17 = tpu.memref_squeeze %16 : memref<1x!tpu.dma_semaphore, #tpu.memory_space<semaphore_mem>> -> memref<!tpu.dma_semaphore, #tpu.memory_space<semaphore_mem>>
    tpu.enqueue_dma source(%13 : memref<128x128xf32, #tpu.memory_space<any>>) target(%15 : memref<128x128xf32, #tpu.memory_space<vmem>>) target_semaphore(%17 : memref<!tpu.dma_semaphore, #tpu.memory_space<semaphore_mem>>)
    %c3_i32 = arith.constant 3 : i32
    %c3_i32_18 = arith.constant 3 : i32
    %c3_i32_19 = arith.constant 3 : i32
    %c0_i32_20 = arith.constant 0 : i32
    %c0_i32_21 = arith.constant 0 : i32
    %18 = tpu.memref_slice %arg2[%c3_i32, %c0_i32_20, %c0_i32_21] : memref<6x128x128xf32, #tpu.memory_space<any>> -> memref<1x128x128xf32, #tpu.memory_space<any>>
    %19 = tpu.memref_squeeze %18 : memref<1x128x128xf32, #tpu.memory_space<any>> -> memref<128x128xf32, #tpu.memory_space<any>>
    %c0_i32_22 = arith.constant 0 : i32
    %c0_i32_23 = arith.constant 0 : i32
    %20 = tpu.memref_slice %arg5[%c3_i32_18, %c0_i32_22, %c0_i32_23] : memref<6x128x128xf32, #tpu.memory_space<vmem>> -> memref<1x128x128xf32, #tpu.memory_space<vmem>>
    %21 = tpu.memref_squeeze %20 : memref<1x128x128xf32, #tpu.memory_space<vmem>> -> memref<128x128xf32, #tpu.memory_space<vmem>>
    %22 = tpu.memref_slice %arg6[%c3_i32_19] : memref<6x!tpu.dma_semaphore, #tpu.memory_space<semaphore_mem>> -> memref<1x!tpu.dma_semaphore, #tpu.memory_space<semaphore_mem>>
    %23 = tpu.memref_squeeze %22 : memref<1x!tpu.dma_semaphore, #tpu.memory_space<semaphore_mem>> -> memref<!tpu.dma_semaphore, #tpu.memory_space<semaphore_mem>>
    tpu.enqueue_dma source(%19 : memref<128x128xf32, #tpu.memory_space<any>>) target(%21 : memref<128x128xf32, #tpu.memory_space<vmem>>) target_semaphore(%23 : memref<!tpu.dma_semaphore, #tpu.memory_space<semaphore_mem>>)
    %c4_i32 = arith.constant 4 : i32
    %c4_i32_24 = arith.constant 4 : i32
    %c4_i32_25 = arith.constant 4 : i32
    %c0_i32_26 = arith.constant 0 : i32
    %c0_i32_27 = arith.constant 0 : i32
    %24 = tpu.memref_slice %arg2[%c4_i32, %c0_i32_26, %c0_i32_27] : memref<6x128x128xf32, #tpu.memory_space<any>> -> memref<1x128x128xf32, #tpu.memory_space<any>>
    %25 = tpu.memref_squeeze %24 : memref<1x128x128xf32, #tpu.memory_space<any>> -> memref<128x128xf32, #tpu.memory_space<any>>
    %c0_i32_28 = arith.constant 0 : i32
    %c0_i32_29 = arith.constant 0 : i32
    %26 = tpu.memref_slice %arg5[%c4_i32_24, %c0_i32_28, %c0_i32_29] : memref<6x128x128xf32, #tpu.memory_space<vmem>> -> memref<1x128x128xf32, #tpu.memory_space<vmem>>
    %27 = tpu.memref_squeeze %26 : memref<1x128x128xf32, #tpu.memory_space<vmem>> -> memref<128x128xf32, #tpu.memory_space<vmem>>
    %28 = tpu.memref_slice %arg6[%c4_i32_25] : memref<6x!tpu.dma_semaphore, #tpu.memory_space<semaphore_mem>> -> memref<1x!tpu.dma_semaphore, #tpu.memory_space<semaphore_mem>>
    %29 = tpu.memref_squeeze %28 : memref<1x!tpu.dma_semaphore, #tpu.memory_space<semaphore_mem>> -> memref<!tpu.dma_semaphore, #tpu.memory_space<semaphore_mem>>
    tpu.enqueue_dma source(%25 : memref<128x128xf32, #tpu.memory_space<any>>) target(%27 : memref<128x128xf32, #tpu.memory_space<vmem>>) target_semaphore(%29 : memref<!tpu.dma_semaphore, #tpu.memory_space<semaphore_mem>>)
    %c5_i32 = arith.constant 5 : i32
    %c5_i32_30 = arith.constant 5 : i32
    %c5_i32_31 = arith.constant 5 : i32
    %c0_i32_32 = arith.constant 0 : i32
    %c0_i32_33 = arith.constant 0 : i32
    %30 = tpu.memref_slice %arg2[%c5_i32, %c0_i32_32, %c0_i32_33] : memref<6x128x128xf32, #tpu.memory_space<any>> -> memref<1x128x128xf32, #tpu.memory_space<any>>
    %31 = tpu.memref_squeeze %30 : memref<1x128x128xf32, #tpu.memory_space<any>> -> memref<128x128xf32, #tpu.memory_space<any>>
    %c0_i32_34 = arith.constant 0 : i32
    %c0_i32_35 = arith.constant 0 : i32
    %32 = tpu.memref_slice %arg5[%c5_i32_30, %c0_i32_34, %c0_i32_35] : memref<6x128x128xf32, #tpu.memory_space<vmem>> -> memref<1x128x128xf32, #tpu.memory_space<vmem>>
    %33 = tpu.memref_squeeze %32 : memref<1x128x128xf32, #tpu.memory_space<vmem>> -> memref<128x128xf32, #tpu.memory_space<vmem>>
    %34 = tpu.memref_slice %arg6[%c5_i32_31] : memref<6x!tpu.dma_semaphore, #tpu.memory_space<semaphore_mem>> -> memref<1x!tpu.dma_semaphore, #tpu.memory_space<semaphore_mem>>
    %35 = tpu.memref_squeeze %34 : memref<1x!tpu.dma_semaphore, #tpu.memory_space<semaphore_mem>> -> memref<!tpu.dma_semaphore, #tpu.memory_space<semaphore_mem>>
    tpu.enqueue_dma source(%31 : memref<128x128xf32, #tpu.memory_space<any>>) target(%33 : memref<128x128xf32, #tpu.memory_space<vmem>>) target_semaphore(%35 : memref<!tpu.dma_semaphore, #tpu.memory_space<semaphore_mem>>)
    %c0 = arith.constant 0 : index
    %36 = memref.load %arg0[%c0] : memref<10xf32, #tpu.memory_space<smem>>
    %c1 = arith.constant 1 : index
    %37 = memref.load %arg0[%c1] : memref<10xf32, #tpu.memory_space<smem>>
    %c2 = arith.constant 2 : index
    %38 = memref.load %arg0[%c2] : memref<10xf32, #tpu.memory_space<smem>>
    %c3 = arith.constant 3 : index
    %39 = memref.load %arg0[%c3] : memref<10xf32, #tpu.memory_space<smem>>
    %c4 = arith.constant 4 : index
    %40 = memref.load %arg0[%c4] : memref<10xf32, #tpu.memory_space<smem>>
    %c5 = arith.constant 5 : index
    %41 = memref.load %arg0[%c5] : memref<10xf32, #tpu.memory_space<smem>>
    %c6 = arith.constant 6 : index
    %42 = memref.load %arg0[%c6] : memref<10xf32, #tpu.memory_space<smem>>
    %c7 = arith.constant 7 : index
    %43 = memref.load %arg0[%c7] : memref<10xf32, #tpu.memory_space<smem>>
    %c8 = arith.constant 8 : index
    %44 = memref.load %arg0[%c8] : memref<10xf32, #tpu.memory_space<smem>>
    %c9 = arith.constant 9 : index
    %45 = memref.load %arg0[%c9] : memref<10xf32, #tpu.memory_space<smem>>
    %c0_i32_36 = arith.constant 0 : i32
    %c0_i32_37 = arith.constant 0 : i32
    %c0_i32_38 = arith.constant 0 : i32
    %c0_i32_39 = arith.constant 0 : i32
    %c0_i32_40 = arith.constant 0 : i32
    %46 = tpu.memref_slice %arg2[%c0_i32_36, %c0_i32_39, %c0_i32_40] : memref<6x128x128xf32, #tpu.memory_space<any>> -> memref<1x128x128xf32, #tpu.memory_space<any>>
    %47 = tpu.memref_squeeze %46 : memref<1x128x128xf32, #tpu.memory_space<any>> -> memref<128x128xf32, #tpu.memory_space<any>>
    %c0_i32_41 = arith.constant 0 : i32
    %c0_i32_42 = arith.constant 0 : i32
    %48 = tpu.memref_slice %arg5[%c0_i32_37, %c0_i32_41, %c0_i32_42] : memref<6x128x128xf32, #tpu.memory_space<vmem>> -> memref<1x128x128xf32, #tpu.memory_space<vmem>>
    %49 = tpu.memref_squeeze %48 : memref<1x128x128xf32, #tpu.memory_space<vmem>> -> memref<128x128xf32, #tpu.memory_space<vmem>>
    %50 = tpu.memref_slice %arg6[%c0_i32_38] : memref<6x!tpu.dma_semaphore, #tpu.memory_space<semaphore_mem>> -> memref<1x!tpu.dma_semaphore, #tpu.memory_space<semaphore_mem>>
    %51 = tpu.memref_squeeze %50 : memref<1x!tpu.dma_semaphore, #tpu.memory_space<semaphore_mem>> -> memref<!tpu.dma_semaphore, #tpu.memory_space<semaphore_mem>>
    tpu.wait_dma2 semaphore(%51 : memref<!tpu.dma_semaphore, #tpu.memory_space<semaphore_mem>>) src(%47 : memref<128x128xf32, #tpu.memory_space<any>>) dst(%49 : memref<128x128xf32, #tpu.memory_space<vmem>>)
    %c0_43 = arith.constant 0 : index
    %c0_44 = arith.constant 0 : index
    %52 = vector.load %arg1[%c0_43, %c0_44] : memref<8x32xf32, #tpu.memory_space<vmem>>, vector<8x32xf32>
    %c0_45 = arith.constant 0 : index
    %c0_46 = arith.constant 0 : index
    %c0_47 = arith.constant 0 : index
    %53 = vector.load %arg5[%c0_45, %c0_46, %c0_47] : memref<6x128x128xf32, #tpu.memory_space<vmem>>, vector<1x128x128xf32>
    %54 = vector.shape_cast %53 : vector<1x128x128xf32> to vector<128x128xf32>
    %55 = vector.extract_strided_slice %54 {offsets = [0, 0], sizes = [32, 128], strides = [1, 1]} : vector<128x128xf32> to vector<32x128xf32>
    %cst = arith.constant dense<0.000000e+00> : vector<8x128xf32>
    %56 = tpu.matmul %52, %55, %cst {dimension_numbers = #tpu.dot_dimension_numbers<[1], [0], [0], [1], [0, 0, 1, 1], [], []>} : vector<8x32xf32>, vector<32x128xf32>, vector<8x128xf32> -> vector<8x128xf32>
    %c5_48 = arith.constant 5 : index
    %c0_49 = arith.constant 0 : index
    %57 = vector.load %arg3[%c5_48, %c0_49] : memref<8x128xf32, #tpu.memory_space<vmem>>, vector<1x128xf32>
    %58 = vector.broadcast %57 : vector<1x128xf32> to vector<8x128xf32>
    %59 = arith.addf %56, %58 : vector<8x128xf32>
    %cst_50 = arith.constant 0.000000e+00 : f32
    %60 = vector.broadcast %cst_50 : f32 to vector<8x128xf32>
    %61 = arith.maximumf %59, %60 : vector<8x128xf32>
    %c1_i32_51 = arith.constant 1 : i32
    %c1_i32_52 = arith.constant 1 : i32
    %c1_i32_53 = arith.constant 1 : i32
    %c0_i32_54 = arith.constant 0 : i32
    %c0_i32_55 = arith.constant 0 : i32
    %62 = tpu.memref_slice %arg2[%c1_i32_51, %c0_i32_54, %c0_i32_55] : memref<6x128x128xf32, #tpu.memory_space<any>> -> memref<1x128x128xf32, #tpu.memory_space<any>>
    %63 = tpu.memref_squeeze %62 : memref<1x128x128xf32, #tpu.memory_space<any>> -> memref<128x128xf32, #tpu.memory_space<any>>
    %c0_i32_56 = arith.constant 0 : i32
    %c0_i32_57 = arith.constant 0 : i32
    %64 = tpu.memref_slice %arg5[%c1_i32_52, %c0_i32_56, %c0_i32_57] : memref<6x128x128xf32, #tpu.memory_space<vmem>> -> memref<1x128x128xf32, #tpu.memory_space<vmem>>
    %65 = tpu.memref_squeeze %64 : memref<1x128x128xf32, #tpu.memory_space<vmem>> -> memref<128x128xf32, #tpu.memory_space<vmem>>
    %66 = tpu.memref_slice %arg6[%c1_i32_53] : memref<6x!tpu.dma_semaphore, #tpu.memory_space<semaphore_mem>> -> memref<1x!tpu.dma_semaphore, #tpu.memory_space<semaphore_mem>>
    %67 = tpu.memref_squeeze %66 : memref<1x!tpu.dma_semaphore, #tpu.memory_space<semaphore_mem>> -> memref<!tpu.dma_semaphore, #tpu.memory_space<semaphore_mem>>
    tpu.wait_dma2 semaphore(%67 : memref<!tpu.dma_semaphore, #tpu.memory_space<semaphore_mem>>) src(%63 : memref<128x128xf32, #tpu.memory_space<any>>) dst(%65 : memref<128x128xf32, #tpu.memory_space<vmem>>)
    %c1_58 = arith.constant 1 : index
    %c0_59 = arith.constant 0 : index
    %c0_60 = arith.constant 0 : index
    %68 = vector.load %arg5[%c1_58, %c0_59, %c0_60] : memref<6x128x128xf32, #tpu.memory_space<vmem>>, vector<1x128x128xf32>
    %69 = vector.shape_cast %68 : vector<1x128x128xf32> to vector<128x128xf32>
    %cst_61 = arith.constant dense<0.000000e+00> : vector<8x128xf32>
    %70 = tpu.matmul %61, %69, %cst_61 {dimension_numbers = #tpu.dot_dimension_numbers<[1], [0], [0], [1], [0, 0, 1, 1], [], []>} : vector<8x128xf32>, vector<128x128xf32>, vector<8x128xf32> -> vector<8x128xf32>
    %cst_62 = arith.constant dense<0.000000e+00> : vector<128xf32>
    %71 = vector.multi_reduction <add>, %61, %cst_62 [0] : vector<8x128xf32> to vector<128xf32>
    %72 = vector.shape_cast %71 : vector<128xf32> to vector<1x128xf32>
    %73 = arith.mulf %61, %61 : vector<8x128xf32>
    %cst_63 = arith.constant dense<0.000000e+00> : vector<128xf32>
    %74 = vector.multi_reduction <add>, %73, %cst_63 [0] : vector<8x128xf32> to vector<128xf32>
    %75 = vector.shape_cast %74 : vector<128xf32> to vector<1x128xf32>
    %76 = tpu.concatenate %72, %75 in 0 : vector<1x128xf32>, vector<1x128xf32> -> vector<2x128xf32>
    %cst_64 = arith.constant dense<0.000000e+00> : vector<2xf32>
    %77 = vector.multi_reduction <add>, %76, %cst_64 [1] : vector<2x128xf32> to vector<2xf32>
    %78 = vector.shape_cast %77 : vector<2xf32> to vector<2x1xf32>
    %79 = vector.extract_strided_slice %78 {offsets = [0, 0], sizes = [1, 1], strides = [1, 1]} : vector<2x1xf32> to vector<1x1xf32>
    %cst_65 = arith.constant 0.001953125 : f32
    %80 = vector.broadcast %cst_65 : f32 to vector<1x1xf32>
    %81 = arith.mulf %79, %80 : vector<1x1xf32>
    %82 = vector.extract_strided_slice %78 {offsets = [1, 0], sizes = [1, 1], strides = [1, 1]} : vector<2x1xf32> to vector<1x1xf32>
    %cst_66 = arith.constant 0.001953125 : f32
    %83 = vector.broadcast %cst_66 : f32 to vector<1x1xf32>
    %84 = arith.mulf %82, %83 : vector<1x1xf32>
    %85 = arith.mulf %81, %81 : vector<1x1xf32>
    %86 = arith.subf %84, %85 : vector<1x1xf32>
    %cst_67 = arith.constant 9.99999974E-6 : f32
    %87 = vector.broadcast %cst_67 : f32 to vector<1x1xf32>
    %88 = arith.addf %86, %87 : vector<1x1xf32>
    %89 = math.rsqrt %88 : vector<1x1xf32>
    %90 = vector.broadcast %36 : f32 to vector<1x1xf32>
    %91 = arith.mulf %89, %90 : vector<1x1xf32>
    %92 = arith.mulf %81, %91 : vector<1x1xf32>
    %93 = vector.broadcast %41 : f32 to vector<1x1xf32>
    %94 = arith.subf %93, %92 : vector<1x1xf32>
    %95 = vector.broadcast %91 : vector<1x1xf32> to vector<8x128xf32>
    %96 = arith.mulf %95, %70 : vector<8x128xf32>
    %c0_68 = arith.constant 0 : index
    %c0_69 = arith.constant 0 : index
    %97 = vector.load %arg3[%c0_68, %c0_69] : memref<8x128xf32, #tpu.memory_space<vmem>>, vector<1x128xf32>
    %98 = vector.broadcast %94 : vector<1x1xf32> to vector<1x128xf32>
    %99 = arith.mulf %98, %97 : vector<1x128xf32>
    %100 = vector.broadcast %99 : vector<1x128xf32> to vector<8x128xf32>
    %101 = arith.addf %96, %100 : vector<8x128xf32>
    %cst_70 = arith.constant 0.000000e+00 : f32
    %102 = vector.broadcast %cst_70 : f32 to vector<8x128xf32>
    %103 = arith.maximumf %101, %102 : vector<8x128xf32>
    %c2_i32_71 = arith.constant 2 : i32
    %c2_i32_72 = arith.constant 2 : i32
    %c2_i32_73 = arith.constant 2 : i32
    %c0_i32_74 = arith.constant 0 : i32
    %c0_i32_75 = arith.constant 0 : i32
    %104 = tpu.memref_slice %arg2[%c2_i32_71, %c0_i32_74, %c0_i32_75] : memref<6x128x128xf32, #tpu.memory_space<any>> -> memref<1x128x128xf32, #tpu.memory_space<any>>
    %105 = tpu.memref_squeeze %104 : memref<1x128x128xf32, #tpu.memory_space<any>> -> memref<128x128xf32, #tpu.memory_space<any>>
    %c0_i32_76 = arith.constant 0 : i32
    %c0_i32_77 = arith.constant 0 : i32
    %106 = tpu.memref_slice %arg5[%c2_i32_72, %c0_i32_76, %c0_i32_77] : memref<6x128x128xf32, #tpu.memory_space<vmem>> -> memref<1x128x128xf32, #tpu.memory_space<vmem>>
    %107 = tpu.memref_squeeze %106 : memref<1x128x128xf32, #tpu.memory_space<vmem>> -> memref<128x128xf32, #tpu.memory_space<vmem>>
    %108 = tpu.memref_slice %arg6[%c2_i32_73] : memref<6x!tpu.dma_semaphore, #tpu.memory_space<semaphore_mem>> -> memref<1x!tpu.dma_semaphore, #tpu.memory_space<semaphore_mem>>
    %109 = tpu.memref_squeeze %108 : memref<1x!tpu.dma_semaphore, #tpu.memory_space<semaphore_mem>> -> memref<!tpu.dma_semaphore, #tpu.memory_space<semaphore_mem>>
    tpu.wait_dma2 semaphore(%109 : memref<!tpu.dma_semaphore, #tpu.memory_space<semaphore_mem>>) src(%105 : memref<128x128xf32, #tpu.memory_space<any>>) dst(%107 : memref<128x128xf32, #tpu.memory_space<vmem>>)
    %c2_78 = arith.constant 2 : index
    %c0_79 = arith.constant 0 : index
    %c0_80 = arith.constant 0 : index
    %110 = vector.load %arg5[%c2_78, %c0_79, %c0_80] : memref<6x128x128xf32, #tpu.memory_space<vmem>>, vector<1x128x128xf32>
    %111 = vector.shape_cast %110 : vector<1x128x128xf32> to vector<128x128xf32>
    %cst_81 = arith.constant dense<0.000000e+00> : vector<8x128xf32>
    %112 = tpu.matmul %103, %111, %cst_81 {dimension_numbers = #tpu.dot_dimension_numbers<[1], [0], [0], [1], [0, 0, 1, 1], [], []>} : vector<8x128xf32>, vector<128x128xf32>, vector<8x128xf32> -> vector<8x128xf32>
    %cst_82 = arith.constant dense<0.000000e+00> : vector<128xf32>
    %113 = vector.multi_reduction <add>, %103, %cst_82 [0] : vector<8x128xf32> to vector<128xf32>
    %114 = vector.shape_cast %113 : vector<128xf32> to vector<1x128xf32>
    %115 = arith.mulf %103, %103 : vector<8x128xf32>
    %cst_83 = arith.constant dense<0.000000e+00> : vector<128xf32>
    %116 = vector.multi_reduction <add>, %115, %cst_83 [0] : vector<8x128xf32> to vector<128xf32>
    %117 = vector.shape_cast %116 : vector<128xf32> to vector<1x128xf32>
    %118 = tpu.concatenate %114, %117 in 0 : vector<1x128xf32>, vector<1x128xf32> -> vector<2x128xf32>
    %cst_84 = arith.constant dense<0.000000e+00> : vector<2xf32>
    %119 = vector.multi_reduction <add>, %118, %cst_84 [1] : vector<2x128xf32> to vector<2xf32>
    %120 = vector.shape_cast %119 : vector<2xf32> to vector<2x1xf32>
    %121 = vector.extract_strided_slice %120 {offsets = [0, 0], sizes = [1, 1], strides = [1, 1]} : vector<2x1xf32> to vector<1x1xf32>
    %cst_85 = arith.constant 0.001953125 : f32
    %122 = vector.broadcast %cst_85 : f32 to vector<1x1xf32>
    %123 = arith.mulf %121, %122 : vector<1x1xf32>
    %124 = vector.extract_strided_slice %120 {offsets = [1, 0], sizes = [1, 1], strides = [1, 1]} : vector<2x1xf32> to vector<1x1xf32>
    %cst_86 = arith.constant 0.001953125 : f32
    %125 = vector.broadcast %cst_86 : f32 to vector<1x1xf32>
    %126 = arith.mulf %124, %125 : vector<1x1xf32>
    %127 = arith.mulf %123, %123 : vector<1x1xf32>
    %128 = arith.subf %126, %127 : vector<1x1xf32>
    %cst_87 = arith.constant 9.99999974E-6 : f32
    %129 = vector.broadcast %cst_87 : f32 to vector<1x1xf32>
    %130 = arith.addf %128, %129 : vector<1x1xf32>
    %131 = math.rsqrt %130 : vector<1x1xf32>
    %132 = vector.broadcast %37 : f32 to vector<1x1xf32>
    %133 = arith.mulf %131, %132 : vector<1x1xf32>
    %134 = arith.mulf %123, %133 : vector<1x1xf32>
    %135 = vector.broadcast %42 : f32 to vector<1x1xf32>
    %136 = arith.subf %135, %134 : vector<1x1xf32>
    %137 = vector.broadcast %133 : vector<1x1xf32> to vector<8x128xf32>
    %138 = arith.mulf %137, %112 : vector<8x128xf32>
    %c1_88 = arith.constant 1 : index
    %c0_89 = arith.constant 0 : index
    %139 = vector.load %arg3[%c1_88, %c0_89] : memref<8x128xf32, #tpu.memory_space<vmem>>, vector<1x128xf32>
    %140 = vector.broadcast %136 : vector<1x1xf32> to vector<1x128xf32>
    %141 = arith.mulf %140, %139 : vector<1x128xf32>
    %142 = vector.broadcast %141 : vector<1x128xf32> to vector<8x128xf32>
    %143 = arith.addf %138, %142 : vector<8x128xf32>
    %cst_90 = arith.constant 0.000000e+00 : f32
    %144 = vector.broadcast %cst_90 : f32 to vector<8x128xf32>
    %145 = arith.maximumf %143, %144 : vector<8x128xf32>
    %c3_i32_91 = arith.constant 3 : i32
    %c3_i32_92 = arith.constant 3 : i32
    %c3_i32_93 = arith.constant 3 : i32
    %c0_i32_94 = arith.constant 0 : i32
    %c0_i32_95 = arith.constant 0 : i32
    %146 = tpu.memref_slice %arg2[%c3_i32_91, %c0_i32_94, %c0_i32_95] : memref<6x128x128xf32, #tpu.memory_space<any>> -> memref<1x128x128xf32, #tpu.memory_space<any>>
    %147 = tpu.memref_squeeze %146 : memref<1x128x128xf32, #tpu.memory_space<any>> -> memref<128x128xf32, #tpu.memory_space<any>>
    %c0_i32_96 = arith.constant 0 : i32
    %c0_i32_97 = arith.constant 0 : i32
    %148 = tpu.memref_slice %arg5[%c3_i32_92, %c0_i32_96, %c0_i32_97] : memref<6x128x128xf32, #tpu.memory_space<vmem>> -> memref<1x128x128xf32, #tpu.memory_space<vmem>>
    %149 = tpu.memref_squeeze %148 : memref<1x128x128xf32, #tpu.memory_space<vmem>> -> memref<128x128xf32, #tpu.memory_space<vmem>>
    %150 = tpu.memref_slice %arg6[%c3_i32_93] : memref<6x!tpu.dma_semaphore, #tpu.memory_space<semaphore_mem>> -> memref<1x!tpu.dma_semaphore, #tpu.memory_space<semaphore_mem>>
    %151 = tpu.memref_squeeze %150 : memref<1x!tpu.dma_semaphore, #tpu.memory_space<semaphore_mem>> -> memref<!tpu.dma_semaphore, #tpu.memory_space<semaphore_mem>>
    tpu.wait_dma2 semaphore(%151 : memref<!tpu.dma_semaphore, #tpu.memory_space<semaphore_mem>>) src(%147 : memref<128x128xf32, #tpu.memory_space<any>>) dst(%149 : memref<128x128xf32, #tpu.memory_space<vmem>>)
    %c3_98 = arith.constant 3 : index
    %c0_99 = arith.constant 0 : index
    %c0_100 = arith.constant 0 : index
    %152 = vector.load %arg5[%c3_98, %c0_99, %c0_100] : memref<6x128x128xf32, #tpu.memory_space<vmem>>, vector<1x128x128xf32>
    %153 = vector.shape_cast %152 : vector<1x128x128xf32> to vector<128x128xf32>
    %cst_101 = arith.constant dense<0.000000e+00> : vector<8x128xf32>
    %154 = tpu.matmul %145, %153, %cst_101 {dimension_numbers = #tpu.dot_dimension_numbers<[1], [0], [0], [1], [0, 0, 1, 1], [], []>} : vector<8x128xf32>, vector<128x128xf32>, vector<8x128xf32> -> vector<8x128xf32>
    %cst_102 = arith.constant dense<0.000000e+00> : vector<128xf32>
    %155 = vector.multi_reduction <add>, %145, %cst_102 [0] : vector<8x128xf32> to vector<128xf32>
    %156 = vector.shape_cast %155 : vector<128xf32> to vector<1x128xf32>
    %157 = arith.mulf %145, %145 : vector<8x128xf32>
    %cst_103 = arith.constant dense<0.000000e+00> : vector<128xf32>
    %158 = vector.multi_reduction <add>, %157, %cst_103 [0] : vector<8x128xf32> to vector<128xf32>
    %159 = vector.shape_cast %158 : vector<128xf32> to vector<1x128xf32>
    %160 = tpu.concatenate %156, %159 in 0 : vector<1x128xf32>, vector<1x128xf32> -> vector<2x128xf32>
    %cst_104 = arith.constant dense<0.000000e+00> : vector<2xf32>
    %161 = vector.multi_reduction <add>, %160, %cst_104 [1] : vector<2x128xf32> to vector<2xf32>
    %162 = vector.shape_cast %161 : vector<2xf32> to vector<2x1xf32>
    %163 = vector.extract_strided_slice %162 {offsets = [0, 0], sizes = [1, 1], strides = [1, 1]} : vector<2x1xf32> to vector<1x1xf32>
    %cst_105 = arith.constant 0.001953125 : f32
    %164 = vector.broadcast %cst_105 : f32 to vector<1x1xf32>
    %165 = arith.mulf %163, %164 : vector<1x1xf32>
    %166 = vector.extract_strided_slice %162 {offsets = [1, 0], sizes = [1, 1], strides = [1, 1]} : vector<2x1xf32> to vector<1x1xf32>
    %cst_106 = arith.constant 0.001953125 : f32
    %167 = vector.broadcast %cst_106 : f32 to vector<1x1xf32>
    %168 = arith.mulf %166, %167 : vector<1x1xf32>
    %169 = arith.mulf %165, %165 : vector<1x1xf32>
    %170 = arith.subf %168, %169 : vector<1x1xf32>
    %cst_107 = arith.constant 9.99999974E-6 : f32
    %171 = vector.broadcast %cst_107 : f32 to vector<1x1xf32>
    %172 = arith.addf %170, %171 : vector<1x1xf32>
    %173 = math.rsqrt %172 : vector<1x1xf32>
    %174 = vector.broadcast %38 : f32 to vector<1x1xf32>
    %175 = arith.mulf %173, %174 : vector<1x1xf32>
    %176 = arith.mulf %165, %175 : vector<1x1xf32>
    %177 = vector.broadcast %43 : f32 to vector<1x1xf32>
    %178 = arith.subf %177, %176 : vector<1x1xf32>
    %179 = vector.broadcast %175 : vector<1x1xf32> to vector<8x128xf32>
    %180 = arith.mulf %179, %154 : vector<8x128xf32>
    %c2_108 = arith.constant 2 : index
    %c0_109 = arith.constant 0 : index
    %181 = vector.load %arg3[%c2_108, %c0_109] : memref<8x128xf32, #tpu.memory_space<vmem>>, vector<1x128xf32>
    %182 = vector.broadcast %178 : vector<1x1xf32> to vector<1x128xf32>
    %183 = arith.mulf %182, %181 : vector<1x128xf32>
    %184 = vector.broadcast %183 : vector<1x128xf32> to vector<8x128xf32>
    %185 = arith.addf %180, %184 : vector<8x128xf32>
    %cst_110 = arith.constant 0.000000e+00 : f32
    %186 = vector.broadcast %cst_110 : f32 to vector<8x128xf32>
    %187 = arith.maximumf %185, %186 : vector<8x128xf32>
    %c4_i32_111 = arith.constant 4 : i32
    %c4_i32_112 = arith.constant 4 : i32
    %c4_i32_113 = arith.constant 4 : i32
    %c0_i32_114 = arith.constant 0 : i32
    %c0_i32_115 = arith.constant 0 : i32
    %188 = tpu.memref_slice %arg2[%c4_i32_111, %c0_i32_114, %c0_i32_115] : memref<6x128x128xf32, #tpu.memory_space<any>> -> memref<1x128x128xf32, #tpu.memory_space<any>>
    %189 = tpu.memref_squeeze %188 : memref<1x128x128xf32, #tpu.memory_space<any>> -> memref<128x128xf32, #tpu.memory_space<any>>
    %c0_i32_116 = arith.constant 0 : i32
    %c0_i32_117 = arith.constant 0 : i32
    %190 = tpu.memref_slice %arg5[%c4_i32_112, %c0_i32_116, %c0_i32_117] : memref<6x128x128xf32, #tpu.memory_space<vmem>> -> memref<1x128x128xf32, #tpu.memory_space<vmem>>
    %191 = tpu.memref_squeeze %190 : memref<1x128x128xf32, #tpu.memory_space<vmem>> -> memref<128x128xf32, #tpu.memory_space<vmem>>
    %192 = tpu.memref_slice %arg6[%c4_i32_113] : memref<6x!tpu.dma_semaphore, #tpu.memory_space<semaphore_mem>> -> memref<1x!tpu.dma_semaphore, #tpu.memory_space<semaphore_mem>>
    %193 = tpu.memref_squeeze %192 : memref<1x!tpu.dma_semaphore, #tpu.memory_space<semaphore_mem>> -> memref<!tpu.dma_semaphore, #tpu.memory_space<semaphore_mem>>
    tpu.wait_dma2 semaphore(%193 : memref<!tpu.dma_semaphore, #tpu.memory_space<semaphore_mem>>) src(%189 : memref<128x128xf32, #tpu.memory_space<any>>) dst(%191 : memref<128x128xf32, #tpu.memory_space<vmem>>)
    %c4_118 = arith.constant 4 : index
    %c0_119 = arith.constant 0 : index
    %c0_120 = arith.constant 0 : index
    %194 = vector.load %arg5[%c4_118, %c0_119, %c0_120] : memref<6x128x128xf32, #tpu.memory_space<vmem>>, vector<1x128x128xf32>
    %195 = vector.shape_cast %194 : vector<1x128x128xf32> to vector<128x128xf32>
    %cst_121 = arith.constant dense<0.000000e+00> : vector<8x128xf32>
    %196 = tpu.matmul %187, %195, %cst_121 {dimension_numbers = #tpu.dot_dimension_numbers<[1], [0], [0], [1], [0, 0, 1, 1], [], []>} : vector<8x128xf32>, vector<128x128xf32>, vector<8x128xf32> -> vector<8x128xf32>
    %cst_122 = arith.constant dense<0.000000e+00> : vector<128xf32>
    %197 = vector.multi_reduction <add>, %187, %cst_122 [0] : vector<8x128xf32> to vector<128xf32>
    %198 = vector.shape_cast %197 : vector<128xf32> to vector<1x128xf32>
    %199 = arith.mulf %187, %187 : vector<8x128xf32>
    %cst_123 = arith.constant dense<0.000000e+00> : vector<128xf32>
    %200 = vector.multi_reduction <add>, %199, %cst_123 [0] : vector<8x128xf32> to vector<128xf32>
    %201 = vector.shape_cast %200 : vector<128xf32> to vector<1x128xf32>
    %202 = tpu.concatenate %198, %201 in 0 : vector<1x128xf32>, vector<1x128xf32> -> vector<2x128xf32>
    %cst_124 = arith.constant dense<0.000000e+00> : vector<2xf32>
    %203 = vector.multi_reduction <add>, %202, %cst_124 [1] : vector<2x128xf32> to vector<2xf32>
    %204 = vector.shape_cast %203 : vector<2xf32> to vector<2x1xf32>
    %205 = vector.extract_strided_slice %204 {offsets = [0, 0], sizes = [1, 1], strides = [1, 1]} : vector<2x1xf32> to vector<1x1xf32>
    %cst_125 = arith.constant 0.001953125 : f32
    %206 = vector.broadcast %cst_125 : f32 to vector<1x1xf32>
    %207 = arith.mulf %205, %206 : vector<1x1xf32>
    %208 = vector.extract_strided_slice %204 {offsets = [1, 0], sizes = [1, 1], strides = [1, 1]} : vector<2x1xf32> to vector<1x1xf32>
    %cst_126 = arith.constant 0.001953125 : f32
    %209 = vector.broadcast %cst_126 : f32 to vector<1x1xf32>
    %210 = arith.mulf %208, %209 : vector<1x1xf32>
    %211 = arith.mulf %207, %207 : vector<1x1xf32>
    %212 = arith.subf %210, %211 : vector<1x1xf32>
    %cst_127 = arith.constant 9.99999974E-6 : f32
    %213 = vector.broadcast %cst_127 : f32 to vector<1x1xf32>
    %214 = arith.addf %212, %213 : vector<1x1xf32>
    %215 = math.rsqrt %214 : vector<1x1xf32>
    %216 = vector.broadcast %39 : f32 to vector<1x1xf32>
    %217 = arith.mulf %215, %216 : vector<1x1xf32>
    %218 = arith.mulf %207, %217 : vector<1x1xf32>
    %219 = vector.broadcast %44 : f32 to vector<1x1xf32>
    %220 = arith.subf %219, %218 : vector<1x1xf32>
    %221 = vector.broadcast %217 : vector<1x1xf32> to vector<8x128xf32>
    %222 = arith.mulf %221, %196 : vector<8x128xf32>
    %c3_128 = arith.constant 3 : index
    %c0_129 = arith.constant 0 : index
    %223 = vector.load %arg3[%c3_128, %c0_129] : memref<8x128xf32, #tpu.memory_space<vmem>>, vector<1x128xf32>
    %224 = vector.broadcast %220 : vector<1x1xf32> to vector<1x128xf32>
    %225 = arith.mulf %224, %223 : vector<1x128xf32>
    %226 = vector.broadcast %225 : vector<1x128xf32> to vector<8x128xf32>
    %227 = arith.addf %222, %226 : vector<8x128xf32>
    %cst_130 = arith.constant 0.000000e+00 : f32
    %228 = vector.broadcast %cst_130 : f32 to vector<8x128xf32>
    %229 = arith.maximumf %227, %228 : vector<8x128xf32>
    %c5_i32_131 = arith.constant 5 : i32
    %c5_i32_132 = arith.constant 5 : i32
    %c5_i32_133 = arith.constant 5 : i32
    %c0_i32_134 = arith.constant 0 : i32
    %c0_i32_135 = arith.constant 0 : i32
    %230 = tpu.memref_slice %arg2[%c5_i32_131, %c0_i32_134, %c0_i32_135] : memref<6x128x128xf32, #tpu.memory_space<any>> -> memref<1x128x128xf32, #tpu.memory_space<any>>
    %231 = tpu.memref_squeeze %230 : memref<1x128x128xf32, #tpu.memory_space<any>> -> memref<128x128xf32, #tpu.memory_space<any>>
    %c0_i32_136 = arith.constant 0 : i32
    %c0_i32_137 = arith.constant 0 : i32
    %232 = tpu.memref_slice %arg5[%c5_i32_132, %c0_i32_136, %c0_i32_137] : memref<6x128x128xf32, #tpu.memory_space<vmem>> -> memref<1x128x128xf32, #tpu.memory_space<vmem>>
    %233 = tpu.memref_squeeze %232 : memref<1x128x128xf32, #tpu.memory_space<vmem>> -> memref<128x128xf32, #tpu.memory_space<vmem>>
    %234 = tpu.memref_slice %arg6[%c5_i32_133] : memref<6x!tpu.dma_semaphore, #tpu.memory_space<semaphore_mem>> -> memref<1x!tpu.dma_semaphore, #tpu.memory_space<semaphore_mem>>
    %235 = tpu.memref_squeeze %234 : memref<1x!tpu.dma_semaphore, #tpu.memory_space<semaphore_mem>> -> memref<!tpu.dma_semaphore, #tpu.memory_space<semaphore_mem>>
    tpu.wait_dma2 semaphore(%235 : memref<!tpu.dma_semaphore, #tpu.memory_space<semaphore_mem>>) src(%231 : memref<128x128xf32, #tpu.memory_space<any>>) dst(%233 : memref<128x128xf32, #tpu.memory_space<vmem>>)
    %c5_138 = arith.constant 5 : index
    %c0_139 = arith.constant 0 : index
    %c0_140 = arith.constant 0 : index
    %236 = vector.load %arg5[%c5_138, %c0_139, %c0_140] : memref<6x128x128xf32, #tpu.memory_space<vmem>>, vector<1x128x128xf32>
    %237 = vector.shape_cast %236 : vector<1x128x128xf32> to vector<128x128xf32>
    %cst_141 = arith.constant dense<0.000000e+00> : vector<8x128xf32>
    %238 = tpu.matmul %229, %237, %cst_141 {dimension_numbers = #tpu.dot_dimension_numbers<[1], [0], [0], [1], [0, 0, 1, 1], [], []>} : vector<8x128xf32>, vector<128x128xf32>, vector<8x128xf32> -> vector<8x128xf32>
    %cst_142 = arith.constant dense<0.000000e+00> : vector<128xf32>
    %239 = vector.multi_reduction <add>, %229, %cst_142 [0] : vector<8x128xf32> to vector<128xf32>
    %240 = vector.shape_cast %239 : vector<128xf32> to vector<1x128xf32>
    %241 = arith.mulf %229, %229 : vector<8x128xf32>
    %cst_143 = arith.constant dense<0.000000e+00> : vector<128xf32>
    %242 = vector.multi_reduction <add>, %241, %cst_143 [0] : vector<8x128xf32> to vector<128xf32>
    %243 = vector.shape_cast %242 : vector<128xf32> to vector<1x128xf32>
    %244 = tpu.concatenate %240, %243 in 0 : vector<1x128xf32>, vector<1x128xf32> -> vector<2x128xf32>
    %cst_144 = arith.constant dense<0.000000e+00> : vector<2xf32>
    %245 = vector.multi_reduction <add>, %244, %cst_144 [1] : vector<2x128xf32> to vector<2xf32>
    %246 = vector.shape_cast %245 : vector<2xf32> to vector<2x1xf32>
    %247 = vector.extract_strided_slice %246 {offsets = [0, 0], sizes = [1, 1], strides = [1, 1]} : vector<2x1xf32> to vector<1x1xf32>
    %cst_145 = arith.constant 0.001953125 : f32
    %248 = vector.broadcast %cst_145 : f32 to vector<1x1xf32>
    %249 = arith.mulf %247, %248 : vector<1x1xf32>
    %250 = vector.extract_strided_slice %246 {offsets = [1, 0], sizes = [1, 1], strides = [1, 1]} : vector<2x1xf32> to vector<1x1xf32>
    %cst_146 = arith.constant 0.001953125 : f32
    %251 = vector.broadcast %cst_146 : f32 to vector<1x1xf32>
    %252 = arith.mulf %250, %251 : vector<1x1xf32>
    %253 = arith.mulf %249, %249 : vector<1x1xf32>
    %254 = arith.subf %252, %253 : vector<1x1xf32>
    %cst_147 = arith.constant 9.99999974E-6 : f32
    %255 = vector.broadcast %cst_147 : f32 to vector<1x1xf32>
    %256 = arith.addf %254, %255 : vector<1x1xf32>
    %257 = math.rsqrt %256 : vector<1x1xf32>
    %258 = vector.broadcast %40 : f32 to vector<1x1xf32>
    %259 = arith.mulf %257, %258 : vector<1x1xf32>
    %260 = arith.mulf %249, %259 : vector<1x1xf32>
    %261 = vector.broadcast %45 : f32 to vector<1x1xf32>
    %262 = arith.subf %261, %260 : vector<1x1xf32>
    %263 = vector.broadcast %259 : vector<1x1xf32> to vector<8x128xf32>
    %264 = arith.mulf %263, %238 : vector<8x128xf32>
    %c4_148 = arith.constant 4 : index
    %c0_149 = arith.constant 0 : index
    %265 = vector.load %arg3[%c4_148, %c0_149] : memref<8x128xf32, #tpu.memory_space<vmem>>, vector<1x128xf32>
    %266 = vector.broadcast %262 : vector<1x1xf32> to vector<1x128xf32>
    %267 = arith.mulf %266, %265 : vector<1x128xf32>
    %268 = vector.broadcast %267 : vector<1x128xf32> to vector<8x128xf32>
    %269 = arith.addf %264, %268 : vector<8x128xf32>
    %c6_150 = arith.constant 6 : index
    %c0_151 = arith.constant 0 : index
    %270 = vector.load %arg3[%c6_150, %c0_151] : memref<8x128xf32, #tpu.memory_space<vmem>>, vector<1x128xf32>
    %271 = vector.broadcast %270 : vector<1x128xf32> to vector<8x128xf32>
    %272 = arith.addf %269, %271 : vector<8x128xf32>
    %273 = vector.extract_strided_slice %272 {offsets = [0, 0], sizes = [8, 16], strides = [1, 1]} : vector<8x128xf32> to vector<8x16xf32>
    %c0_152 = arith.constant 0 : index
    %c0_153 = arith.constant 0 : index
    %274 = vector.load %arg4[%c0_152, %c0_153] : memref<8x16xf32, #tpu.memory_space<vmem>>, vector<8x16xf32>
    tpu.vector_store %arg4[%c0_152, %c0_153], %273 {strides = array<i32>} : memref<8x16xf32, #tpu.memory_space<vmem>>, vector<8x16xf32>,
    return
  }
}

</mosaic_0001>

<bundles_post_ra>
// kernel: tpu_custom_call.1
= control target key start
LH: loop header
LB: loop body
LE: loop exit
PB: predicated region body
PF: predicated region fallthrough
CT: control target
= control target key end

     0   :  { %9 = vsyncpa [#allocation7], 0  ;;  %s1814_s0 = inlined_call_operand.hbm [shape: f32[10], index: 0, kind: input, shape index: {}]   ;;  %s1815_s1 = inlined_call_operand.hbm [shape: f32[8,32], index: 1, kind: input, shape index: {}]   ;;  %s1816_s2 = inlined_call_operand.hbm [shape: f32[6,128,128], index: 2, kind: input, shape index: {}]   ;;  %s1817_s3 = inlined_call_operand.hbm [shape: f32[8,128], index: 3, kind: input, shape index: {}]   ;;  %s1818_s4 = inlined_call_operand.hbm [shape: f32[8,16], index: 4, kind: output, shape index: {}]  }
   0x1   :  { %10 = vsyncpa [#allocation5], 0 }
   0x2   :  { %11 = vsyncpa [#allocation10], 0 }
   0x3   :  { %12 = vsyncpa [#allocation6], 0  ;;  %s1542_s15 = smov [#allocation4]   ;;  %s1543_s18 = smov [#allocation8]  }
   0x4   :  { %20 = dma.hbm_to_smem %s1814_s0, 16, %s1542_s15, [#allocation7]  }
   0x5   :  { %s27_s19 = sshll.u32 %s1543_s18, 4  ;;  %s1544_s20 = smov [#allocation9]   ;;  %s28_s19 = int_to_ptr.vmem [resolvable:$true] %s27_s19 }
   0x6   :  { %s37_s21 = sshll.u32 %s1544_s20, 4  ;;  %s1335_s22 = scalar_lea.vmem %s28_s19, 128  ;;  %s38_s21 = int_to_ptr.vmem [resolvable:$true] %s37_s21 }
   0x7   :  { %p1336_p0 = scmp.ne.s32.totalorder %s28_s19, %s1335_s22  ;;  %p1340_p1 = scmp.lt.s32.totalorder %s28_s19, %s28_s19 }
   0x8   :  { %p1341_p2 = scmp.lt.s32.totalorder %s1335_s22, %s1335_s22 }
   0xa   :  { %p1342_p3 = por %p1341_p2, %p1340_p1 }
   0xc   :  { %p1343_p4 = pnand %p1342_p3, %p1336_p0 }
   0xe   :  { %1346 = shalt.err (!%p1343_p4)
}
   0xf   :  { %30 = dma.hbm_to_vmem [thread:$0]  %s1815_s1, 128, %s28_s19, [#allocation5]  }
  0x10   :  { %s1355_s25 = scalar_lea.vmem %s38_s21, 128  ;;  %p1360_p6 = scmp.lt.s32.totalorder %s38_s21, %s38_s21 }
  0x11   :  { %p1356_p5 = scmp.ne.s32.totalorder %s38_s21, %s1355_s25  ;;  %p1361_p7 = scmp.lt.s32.totalorder %s1355_s25, %s1355_s25 }
  0x13   :  { %p1362_p8 = por %p1361_p7, %p1360_p6 }
  0x15   :  { %p1363_p9 = pnand %p1362_p8, %p1356_p5 }
  0x17   :  { %1366 = shalt.err (!%p1363_p9)
}
  0x18   :  { %40 = dma.hbm_to_vmem [thread:$0]  %s1817_s3, 128, %s38_s21, [#allocation10]  }
  0x19   :  { %1522 = dma.done.wait [#allocation7], 16  }
  0x1a   :  { %1523 = vsyncadd [#allocation7], 4294967280 }
  0x1b   :  { %1524 = dma.done.wait [#allocation5], 128  }
  0x1c   :  { %1525 = vsyncadd [#allocation5], 4294967168 }
  0x1d   :  { %1526 = dma.done.wait [#allocation10], 128  }
  0x1e   :  { %1527 = vsyncadd [#allocation10], 4294967168 }
  0x1f   :  { %50 = sfence }
  0x20   :  { %s62_s28 = scalar_lea.hbm %s1816_s2, 2048  ;;  %s1545_s29 = smov [#allocation2]  }
  0x21   :  { %s58_s30 = sshll.u32 %s1545_s29, 4  ;;  %s1546_s3 = smov [#allocation2 + $0x80]   ;;  %s1592_s30 = int_to_ptr.vmem [resolvable:$true] %s58_s30 }
  0x22   :  { %s72_s5 = sshll.u32 %s1546_s3, 4  ;;  %s1375_s6 = scalar_lea.vmem %s1592_s30, 2048  ;;  %s73_s5 = int_to_ptr.vmem [resolvable:$true] %s72_s5 }
  0x23   :  { %p1376_p10 = scmp.ne.s32.totalorder %s1592_s30, %s1375_s6  ;;  %s1597_s7 = scalar_lea.vmem %s1592_s30, 12288 }
  0x24   :  { %p1380_p11 = scmp.lt.s32.totalorder %s1592_s30, %s1592_s30  ;;  %p1381_p12 = scmp.lt.s32.totalorder %s1597_s7, %s1375_s6 }
  0x26   :  { %p1382_p13 = por %p1381_p12, %p1380_p11 }
  0x28   :  { %p1383_p0 = pnand %p1382_p13, %p1376_p10 }
  0x2a   :  { %1386 = shalt.err (!%p1383_p0)  }
  0x2b   :  { %61 = dma.hbm_to_vmem [thread:$0]  %s1816_s2, 2048, %s1592_s30, [#allocation3] }
  0x2c   :  { %s76_s12 = scalar_lea.hbm %s1816_s2, 4096  ;;  %s1397_s13 = scalar_lea.vmem %s73_s5, 2048 }
  0x2d   :  { %p1398_p1 = scmp.ne.s32.totalorder %s73_s5, %s1397_s13  ;;  %p1402_p2 = scmp.lt.s32.totalorder %s73_s5, %s1592_s30 }
  0x2e   :  { %p1403_p3 = scmp.lt.s32.totalorder %s1597_s7, %s1397_s13 }
  0x30   :  { %p1404_p4 = por %p1403_p3, %p1402_p2 }
  0x32   :  { %p1405_p5 = pnand %p1404_p4, %p1398_p1 }
  0x34   :  { %1408 = shalt.err (!%p1405_p5)  }
  0x35   :  { %75 = dma.hbm_to_vmem [thread:$0]  %s62_s28, 2048, %s73_s5, [#allocation3 + $0x1] }
  0x36   :  { %s90_s16 = scalar_lea.hbm %s1816_s2, 6144  ;;  %s1547_s17 = smov [#allocation2 + $0x100]  }
  0x37   :  { %s86_s18 = sshll.u32 %s1547_s17, 4  ;;  %s1548_s19 = smov [#allocation2 + $0x180]   ;;  %s87_s18 = int_to_ptr.vmem [resolvable:$true] %s86_s18 }
  0x38   :  { %s100_s20 = sshll.u32 %s1548_s19, 4  ;;  %s1420_s21 = scalar_lea.vmem %s87_s18, 2048  ;;  %s101_s20 = int_to_ptr.vmem [resolvable:$true] %s100_s20 }
  0x39   :  { %p1421_p6 = scmp.ne.s32.totalorder %s87_s18, %s1420_s21  ;;  %p1425_p7 = scmp.lt.s32.totalorder %s87_s18, %s1592_s30 }
  0x3a   :  { %p1426_p8 = scmp.lt.s32.totalorder %s1597_s7, %s1420_s21 }
  0x3c   :  { %p1427_p9 = por %p1426_p8, %p1425_p7 }
  0x3e   :  { %p1428_p10 = pnand %p1427_p9, %p1421_p6 }
  0x40   :  { %1431 = shalt.err (!%p1428_p10)  }
  0x41   :  { %89 = dma.hbm_to_vmem [thread:$0]  %s76_s12, 2048, %s87_s18, [#allocation3 + $0x2] }
  0x42   :  { %s104_s24 = scalar_lea.hbm %s1816_s2, 8192  ;;  %s1443_s25 = scalar_lea.vmem %s101_s20, 2048 }
  0x43   :  { %p1444_p11 = scmp.ne.s32.totalorder %s101_s20, %s1443_s25  ;;  %p1448_p12 = scmp.lt.s32.totalorder %s101_s20, %s1592_s30 }
  0x44   :  { %p1449_p13 = scmp.lt.s32.totalorder %s1597_s7, %s1443_s25 }
  0x46   :  { %p1450_p0 = por %p1449_p13, %p1448_p12 }
  0x48   :  { %p1451_p1 = pnand %p1450_p0, %p1444_p11 }
  0x4a   :  { %1454 = shalt.err (!%p1451_p1)  }
  0x4b   :  { %103 = dma.hbm_to_vmem [thread:$0]  %s90_s16, 2048, %s101_s20, [#allocation3 + $0x3] }
  0x4c   :  { %s118_s1 = scalar_lea.hbm %s1816_s2, 10240  ;;  %s1549_s27 = smov [#allocation2 + $0x200]  }
  0x4d   :  { %s114_s28 = sshll.u32 %s1549_s27, 4  ;;  %s1550_s29 = smov [#allocation2 + $0x280]   ;;  %s115_s28 = int_to_ptr.vmem [resolvable:$true] %s114_s28 }
  0x4e   :  { %s128_s3 = sshll.u32 %s1550_s29, 4  ;;  %s1466_s5 = scalar_lea.vmem %s115_s28, 2048  ;;  %s129_s3 = int_to_ptr.vmem [resolvable:$true] %s128_s3 }
  0x4f   :  { %p1467_p2 = scmp.ne.s32.totalorder %s115_s28, %s1466_s5  ;;  %p1471_p3 = scmp.lt.s32.totalorder %s115_s28, %s1592_s30 }
  0x50   :  { %p1472_p4 = scmp.lt.s32.totalorder %s1597_s7, %s1466_s5 }
  0x52   :  { %p1473_p5 = por %p1472_p4, %p1471_p3 }
  0x54   :  { %p1474_p6 = pnand %p1473_p5, %p1467_p2 }
  0x56   :  { %1477 = shalt.err (!%p1474_p6)  }
  0x57   :  { %117 = dma.hbm_to_vmem [thread:$0]  %s104_s24, 2048, %s115_s28, [#allocation3 + $0x4] }
  0x58   :  { %s1626_s6 = sld [smem:[#allocation4]]  ;;  %s1489_s8 = scalar_lea.vmem %s129_s3, 2048 }
  0x59   :  { %p1490_p7 = scmp.ne.s32.totalorder %s129_s3, %s1489_s8  ;;  %p1494_p8 = scmp.lt.s32.totalorder %s129_s3, %s1592_s30 }
  0x5a   :  { %p1495_p9 = scmp.lt.s32.totalorder %s1597_s7, %s1489_s8 }
  0x5c   :  { %p1496_p10 = por %p1495_p9, %p1494_p8 }
  0x5e   :  { %p1497_p11 = pnand %p1496_p10, %p1490_p7 }
  0x60   :  { %1500 = shalt.err (!%p1497_p11)  }
  0x61   :  { %131 = dma.hbm_to_vmem [thread:$0]  %s118_s1, 2048, %s129_s3, [#allocation3 + $0x5] }
  0x62   :  { %s1630_s2 = sld [smem:[#allocation4 + $0x1]] }
  0x63   :  { %s1632_s9 = sld [smem:[#allocation4 + $0x2]] }
  0x64   :  { %s1634_s10 = sld [smem:[#allocation4 + $0x3]] }
  0x65   :  { %s1636_s11 = sld [smem:[#allocation4 + $0x4]] }
  0x66   :  { %s1638_s12 = sld [smem:[#allocation4 + $0x5]] }
  0x67   :  { %s1640_s13 = sld [smem:[#allocation4 + $0x6]] }
  0x68   :  { %s1642_s14 = sld [smem:[#allocation4 + $0x7]] }
  0x69   :  { %s1644_s30 = sld [smem:[#allocation4 + $0x8]] }
  0x6a   :  { %s1646_s7 = sld [smem:[#allocation4 + $0x9]] }
  0x6b   :  { %1528 = dma.done.wait [#allocation3], 2048 }
  0x6c   :  { %1529 = vsyncadd [#allocation3], 4294965248  ;;  %v1551_v0 = vmov 0.0   ;;  %vm1552_vm0 = vmmov 0   ;;  %v149_v1 = vld [vmem:[#allocation2 + $0x18] sm:$0xff]  ;;  %v148_v2 = vld [vmem:[#allocation2 + $0x10] sm:$0xff] }
  0x6d   :  { %1095 = vmatprep.subr.mxu0 %v1551_v0  ;;  %1103 = vmatprep.mubr.msk.f32.mxu0 %vm1552_vm0, %v1551_v0  ;;  %v147_v3 = vld [vmem:[#allocation2 + $0x8] sm:$0xff]  ;;  %v146_v4 = vld [vmem:[#allocation2] sm:$0xff]  ;;  %vm155_vm1 = vcmask 261120  }
  0x6e   :  { %1096 = vmatpush3.msra.mxu0 %v149_v1  ;;  %v145_v5 = vld [vmem:[#allocation8] sm:$0xff]  ;;  %v996_v6 = vld [vmem:[#allocation9 + $0x5] ss:$0 sm:$0xff] }
  0x6f   :  { %1097 = vmatprep.subr.mxu0 %v1551_v0 }
  0x70   :  { %1098 = vmatpush3.msra.mxu0 %v148_v2 }
  0x71   :  { %1099 = vmatprep.subr.mxu0 %v1551_v0 }
  0x72   :  { %1100 = vmatpush3.msra.mxu0 %v147_v3 }
  0x73   :  { %1101 = vmatprep.subr.mxu0 %v1551_v0 }
  0x74   :  { %1102 = vmatpush3.msra.mxu0 %v146_v4 }
  0x75   :  { %1104 = vmatmul.mubr.msk.f32.vlgmr.msra.gmra.mxu0 %vm155_vm1, %v145_v5 }
 0x135   :  { %v225_v7 = vpop.f32.mrf.mxu0 }
 0x136   :  { %v226_v8 = vadd.f32 %v996_v6, %v225_v7 }
 0x137   :  { %v1105_v9 = vpop.f32.mrf.mxu0 }
 0x138   :  { %v1654_v10 = vmax.f32 %v226_v8, 0.0 }
 0x139   :  { %1530 = dma.done.wait [#allocation3 + $0x1], 2048 }
 0x13a   :  { %1531 = vsyncadd [#allocation3 + $0x1], 4294965248  ;;  %1106 = vmatprep.subr.mxu1 %v1551_v0  ;;  %v318_v11 = vrot.slane %v1654_v10, 4  ;;  %v324_v12 = vmul.f32 %v1654_v10, %v1654_v10  ;;  %1138 = vmatprep.mubr.msk.f32.mxu1 %vm1552_vm0, %v1551_v0  ;;  %v247_v19 = vld [vmem:[#allocation2 + $0xf8] sm:$0xff]  ;;  %v246_v20 = vld [vmem:[#allocation2 + $0xf0] sm:$0xff]  ;;  %vm331_vm2 = vcmask 1040384   ;;  %v345_v49 = vstv %s1626_s6 }
 0x13b   :  { %1107 = vmatpush3.msra.mxu1 %v247_v19  ;;  %v245_v23 = vld [vmem:[#allocation2 + $0xe8] sm:$0xff]  ;;  %v244_v26 = vld [vmem:[#allocation2 + $0xe0] sm:$0xff]  ;;  %vm333_vm3 = vcmask 1041408   ;;  %v243_v28 = vld [vmem:[#allocation2 + $0xd8] sm:$0xff]  ;;  %v1553_v42 = vmov 0   ;;  %v351_v53 = vstv %s1638_s12  ;;  %v364_v58 = vlaneseq }
 0x13c   :  { %v319_v13 = vadd.f32 %v318_v11, %v1654_v10  ;;  %v325_v14 = vrot.slane %v324_v12, 4  ;;  %1108 = vmatprep.subr.mxu1 %v1551_v0  ;;  %v242_v31 = vld [vmem:[#allocation2 + $0xd0] sm:$0xff]  ;;  %v241_v32 = vld [vmem:[#allocation2 + $0xc8] sm:$0xff]  ;;  %v240_v33 = vld [vmem:[#allocation2 + $0xc0] sm:$0xff]  ;;  %1304 = vset.pattern.permute.xlu0 %v1553_v42 }
 0x13d   :  { %1109 = vmatpush3.msra.mxu1 %v246_v20  ;;  %v239_v34 = vld [vmem:[#allocation2 + $0xb8] sm:$0xff]  ;;  %v238_v35 = vld [vmem:[#allocation2 + $0xb0] sm:$0xff]  ;;  %v237_v36 = vld [vmem:[#allocation2 + $0xa8] sm:$0xff]  ;;  %v365_v59 = vshrl.u32 %v364_v58, 7 }
 0x13e   :  { %v320_v15 = vrot.slane %v319_v13, 2  ;;  %v326_v16 = vadd.f32 %v325_v14, %v324_v12  ;;  %1110 = vmatprep.subr.mxu1 %v1551_v0  ;;  %v236_v37 = vld [vmem:[#allocation2 + $0xa0] sm:$0xff]  ;;  %v235_v38 = vld [vmem:[#allocation2 + $0x98] sm:$0xff]  ;;  %v234_v39 = vld [vmem:[#allocation2 + $0x90] sm:$0xff] }
 0x13f   :  { %1111 = vmatpush3.msra.mxu1 %v245_v23  ;;  %v233_v40 = vld [vmem:[#allocation2 + $0x88] sm:$0xff]  ;;  %v232_v41 = vld [vmem:[#allocation2 + $0x80] sm:$0xff]  ;;  %v1684_v61 = vsub.s32 0, %v365_v59 }
 0x140   :  { %v321_v17 = vadd.f32 %v320_v15, %v319_v13  ;;  %v327_v18 = vrot.slane %v326_v16, 2  ;;  %1112 = vmatprep.subr.mxu1 %v1551_v0  ;;  %v357_v60 = vld [vmem:[#allocation9] sm:$0x1] }
 0x141   :  { %1113 = vmatpush3.msra.mxu1 %v244_v26 }
 0x142   :  { %v322_v21 = vrot.slane %v321_v17, 1  ;;  %v328_v22 = vadd.f32 %v327_v18, %v326_v16  ;;  %1114 = vmatprep.subr.mxu1 %v1551_v0 }
 0x143   :  { %1115 = vmatpush3.msra.mxu1 %v243_v28 }
 0x144   :  { %v323_v24 = vadd.f32 %v322_v21, %v321_v17  ;;  %v329_v25 = vrot.slane %v328_v22, 1  ;;  %1116 = vmatprep.subr.mxu1 %v1551_v0 }
 0x145   :  { %1117 = vmatpush3.msra.mxu1 %v242_v31 }
 0x146   :  { %v330_v27 = vadd.f32 %v329_v25, %v328_v22  ;;  %1118 = vmatprep.subr.mxu1 %v1551_v0 }
 0x147   :  { %1119 = vmatpush3.msra.mxu1 %v241_v32 }
 0x148   :  { %v332_v29 = vsel %vm331_vm2, %v323_v24, %v330_v27  ;;  %1120 = vmatprep.subr.mxu1 %v1551_v0 }
 0x149   :  { %v334_v30 = vsel %vm333_vm3, %v332_v29, 0.0  ;;  %1121 = vmatpush3.msra.mxu1 %v240_v33 }
 0x14a   :  { %335 = vadd.xlane.f32.xlu0 %v334_v30  ;;  %1122 = vmatprep.subr.mxu1 %v1551_v0 }
 0x14b   :  { %1123 = vmatpush3.msra.mxu1 %v239_v34 }
 0x14c   :  { %1124 = vmatprep.subr.mxu1 %v1551_v0 }
 0x14d   :  { %1125 = vmatpush3.msra.mxu1 %v238_v35 }
 0x14e   :  { %1126 = vmatprep.subr.mxu1 %v1551_v0 }
 0x14f   :  { %1127 = vmatpush3.msra.mxu1 %v237_v36 }
 0x150   :  { %1128 = vmatprep.subr.mxu1 %v1551_v0 }
 0x151   :  { %1129 = vmatpush3.msra.mxu1 %v236_v37 }
 0x152   :  { %1130 = vmatprep.subr.mxu1 %v1551_v0 }
 0x153   :  { %1131 = vmatpush3.msra.mxu1 %v235_v38 }
 0x154   :  { %1132 = vmatprep.subr.mxu1 %v1551_v0 }
 0x155   :  { %1133 = vmatpush3.msra.mxu1 %v234_v39 }
 0x156   :  { %1134 = vmatprep.subr.mxu1 %v1551_v0 }
 0x157   :  { %1135 = vmatpush3.msra.mxu1 %v233_v40 }
 0x158   :  { %1136 = vmatprep.subr.mxu1 %v1551_v0 }
 0x159   :  { %1137 = vmatpush3.msra.mxu1 %v232_v41 }
 0x15a   :  { %1139 = vmatmul.mubr.f32.vlgmr.msra.gmra.mxu1 %v1654_v10 }
 0x1d3   :  { %v336_v43 = vpop.xlane.xlu0 %335 }
 0x1d4   :  { %v337_v44 = vmul.f32 0.001953125, %v336_v43 }
 0x1d6   :  { %v338_v45 = vmul.f32 %v337_v44, %v337_v44 }
 0x1d8   :  { %v340_v46 = vrot.slane %v338_v45, 7 }
 0x1da   :  { %v342_v47 = vsub.f32 %v337_v44, %v340_v46 }
 0x1dc   :  { %v343_v48 = vadd.f32 1e-05, %v342_v47 }
 0x1de   :  { %1305 = vrsqrt.f32 %v343_v48 }
 0x1eb   :  { %v1306_v50 = vpop.eup %1305 }
 0x1ec   :  { %v346_v51 = vmul.f32 %v1306_v50, %v345_v49 }
 0x1ee   :  { %v348_v52 = vrot.slane %v346_v51, 1 }
 0x1f0   :  { %v350_v54 = vmul.f32 %v348_v52, %v337_v44  ;;  %1281 = vpush %v348_v52 }
 0x1f2   :  { %v352_v55 = vsub.f32 %v351_v53, %v350_v54 }
 0x1f4   :  { %360 = vperm.xlu0 %1304, %v352_v55  }
 0x21a   :  { %v314_v56 = vpop.f32.mrf.mxu1 }
 0x21c   :  { %v1140_v57 = vpop.f32.mrf.mxu1 }
 0x221   :  { %s1282_s15 = spop %1281 }
 0x222   :  { %v354_v62 = vstv %s1282_s15 }
 0x223   :  { %v356_v2 = vmul.f32 %v354_v62, %v314_v56 }
 0x26f   :  { %v361_v63 = vpop.permute.xlu0 %360 }
 0x270   :  { %v363_v1 = vmul.f32 %v361_v63, %v357_v60 }
 0x272   :  { %v367_v3 = vrot.slane %v363_v1, %v1684_v61 }
 0x274   :  { %v368_v4 = vadd.f32 %v367_v3, %v356_v2 }
 0x276   :  { %v1687_v5 = vmax.f32 %v368_v4, 0.0 }
 0x277   :  { %1532 = dma.done.wait [#allocation3 + $0x2], 2048 }
 0x278   :  { %1533 = vsyncadd [#allocation3 + $0x2], 4294965248  ;;  %1141 = vmatprep.subr.mxu0 %v1551_v0  ;;  %v458_v6 = vrot.slane %v1687_v5, 4  ;;  %v464_v7 = vmul.f32 %v1687_v5, %v1687_v5  ;;  %1173 = vmatprep.mubr.msk.f32.mxu0 %vm1552_vm0, %v1551_v0  ;;  %v387_v14 = vld [vmem:[#allocation2 + $0x178] sm:$0xff]  ;;  %v386_v15 = vld [vmem:[#allocation2 + $0x170] sm:$0xff]  ;;  %v483_v44 = vstv %s1630_s2  ;;  %v489_v48 = vstv %s1640_s13 }
 0x279   :  { %1307 = vset.pattern.permute.xlu0 %v1553_v42  ;;  %1142 = vmatpush3.msra.mxu0 %v387_v14  ;;  %v385_v18 = vld [vmem:[#allocation2 + $0x168] sm:$0xff]  ;;  %v384_v21 = vld [vmem:[#allocation2 + $0x160] sm:$0xff]  ;;  %v383_v23 = vld [vmem:[#allocation2 + $0x158] sm:$0xff] }
 0x27a   :  { %v459_v8 = vadd.f32 %v458_v6, %v1687_v5  ;;  %v465_v9 = vrot.slane %v464_v7, 4  ;;  %1143 = vmatprep.subr.mxu0 %v1551_v0  ;;  %v382_v26 = vld [vmem:[#allocation2 + $0x150] sm:$0xff]  ;;  %v381_v27 = vld [vmem:[#allocation2 + $0x148] sm:$0xff]  ;;  %v380_v28 = vld [vmem:[#allocation2 + $0x140] sm:$0xff] }
 0x27b   :  { %1144 = vmatpush3.msra.mxu0 %v386_v15  ;;  %v379_v29 = vld [vmem:[#allocation2 + $0x138] sm:$0xff]  ;;  %v378_v30 = vld [vmem:[#allocation2 + $0x130] sm:$0xff]  ;;  %v377_v31 = vld [vmem:[#allocation2 + $0x128] sm:$0xff] }
 0x27c   :  { %v460_v10 = vrot.slane %v459_v8, 2  ;;  %v466_v11 = vadd.f32 %v465_v9, %v464_v7  ;;  %1145 = vmatprep.subr.mxu0 %v1551_v0  ;;  %v376_v32 = vld [vmem:[#allocation2 + $0x120] sm:$0xff]  ;;  %v375_v33 = vld [vmem:[#allocation2 + $0x118] sm:$0xff]  ;;  %v374_v34 = vld [vmem:[#allocation2 + $0x110] sm:$0xff] }
 0x27d   :  { %1146 = vmatpush3.msra.mxu0 %v385_v18  ;;  %v373_v35 = vld [vmem:[#allocation2 + $0x108] sm:$0xff]  ;;  %v372_v36 = vld [vmem:[#allocation2 + $0x100] sm:$0xff] }
 0x27e   :  { %v461_v12 = vadd.f32 %v460_v10, %v459_v8  ;;  %v467_v13 = vrot.slane %v466_v11, 2  ;;  %1147 = vmatprep.subr.mxu0 %v1551_v0  ;;  %v495_v53 = vld [vmem:[#allocation9 + $0x1] sm:$0x1] }
 0x27f   :  { %1148 = vmatpush3.msra.mxu0 %v384_v21 }
 0x280   :  { %v462_v16 = vrot.slane %v461_v12, 1  ;;  %v468_v17 = vadd.f32 %v467_v13, %v466_v11  ;;  %1149 = vmatprep.subr.mxu0 %v1551_v0 }
 0x281   :  { %1150 = vmatpush3.msra.mxu0 %v383_v23 }
 0x282   :  { %v463_v19 = vadd.f32 %v462_v16, %v461_v12  ;;  %v469_v20 = vrot.slane %v468_v17, 1  ;;  %1151 = vmatprep.subr.mxu0 %v1551_v0 }
 0x283   :  { %1152 = vmatpush3.msra.mxu0 %v382_v26 }
 0x284   :  { %v470_v22 = vadd.f32 %v469_v20, %v468_v17  ;;  %1153 = vmatprep.subr.mxu0 %v1551_v0 }
 0x285   :  { %1154 = vmatpush3.msra.mxu0 %v381_v27 }
 0x286   :  { %v471_v24 = vsel %vm331_vm2, %v463_v19, %v470_v22  ;;  %1155 = vmatprep.subr.mxu0 %v1551_v0 }
 0x287   :  { %v472_v25 = vsel %vm333_vm3, %v471_v24, 0.0  ;;  %1156 = vmatpush3.msra.mxu0 %v380_v28 }
 0x288   :  { %473 = vadd.xlane.f32.xlu0 %v472_v25  ;;  %1157 = vmatprep.subr.mxu0 %v1551_v0 }
 0x289   :  { %1158 = vmatpush3.msra.mxu0 %v379_v29 }
 0x28a   :  { %1159 = vmatprep.subr.mxu0 %v1551_v0 }
 0x28b   :  { %1160 = vmatpush3.msra.mxu0 %v378_v30 }
 0x28c   :  { %1161 = vmatprep.subr.mxu0 %v1551_v0 }
 0x28d   :  { %1162 = vmatpush3.msra.mxu0 %v377_v31 }
 0x28e   :  { %1163 = vmatprep.subr.mxu0 %v1551_v0 }
 0x28f   :  { %1164 = vmatpush3.msra.mxu0 %v376_v32 }
 0x290   :  { %1165 = vmatprep.subr.mxu0 %v1551_v0 }
 0x291   :  { %1166 = vmatpush3.msra.mxu0 %v375_v33 }
 0x292   :  { %1167 = vmatprep.subr.mxu0 %v1551_v0 }
 0x293   :  { %1168 = vmatpush3.msra.mxu0 %v374_v34 }
 0x294   :  { %1169 = vmatprep.subr.mxu0 %v1551_v0 }
 0x295   :  { %1170 = vmatpush3.msra.mxu0 %v373_v35 }
 0x296   :  { %1171 = vmatprep.subr.mxu0 %v1551_v0 }
 0x297   :  { %1172 = vmatpush3.msra.mxu0 %v372_v36 }
 0x298   :  { %1174 = vmatmul.mubr.f32.vlgmr.msra.gmra.mxu0 %v1687_v5 }
 0x311   :  { %v474_v37 = vpop.xlane.xlu0 %473 }
 0x312   :  { %v475_v38 = vmul.f32 0.001953125, %v474_v37 }
 0x314   :  { %v476_v39 = vmul.f32 %v475_v38, %v475_v38 }
 0x316   :  { %v478_v40 = vrot.slane %v476_v39, 7 }
 0x318   :  { %v480_v41 = vsub.f32 %v475_v38, %v478_v40 }
 0x31a   :  { %v481_v43 = vadd.f32 1e-05, %v480_v41 }
 0x31c   :  { %1308 = vrsqrt.f32 %v481_v43 }
 0x329   :  { %v1309_v45 = vpop.eup %1308 }
 0x32a   :  { %v484_v46 = vmul.f32 %v1309_v45, %v483_v44 }
 0x32c   :  { %v486_v47 = vrot.slane %v484_v46, 1 }
 0x32e   :  { %v488_v49 = vmul.f32 %v486_v47, %v475_v38  ;;  %1283 = vpush %v486_v47 }
 0x330   :  { %v490_v50 = vsub.f32 %v489_v48, %v488_v49 }
 0x332   :  { %498 = vperm.xlu0 %1307, %v490_v50  }
 0x358   :  { %v454_v51 = vpop.f32.mrf.mxu0 }
 0x35a   :  { %v1175_v52 = vpop.f32.mrf.mxu0 }
 0x35f   :  { %s1284_s16 = spop %1283 }
 0x360   :  { %v492_v54 = vstv %s1284_s16 }
 0x361   :  { %v494_v57 = vmul.f32 %v492_v54, %v454_v51 }
 0x3ad   :  { %v499_v55 = vpop.permute.xlu0 %498 }
 0x3ae   :  { %v501_v56 = vmul.f32 %v499_v55, %v495_v53 }
 0x3b0   :  { %v505_v58 = vrot.slane %v501_v56, %v1684_v61 }
 0x3b2   :  { %v506_v59 = vadd.f32 %v505_v58, %v494_v57 }
 0x3b4   :  { %v1718_v60 = vmax.f32 %v506_v59, 0.0 }
 0x3b5   :  { %1534 = dma.done.wait [#allocation3 + $0x3], 2048 }
 0x3b6   :  { %1535 = vsyncadd [#allocation3 + $0x3], 4294965248  ;;  %1176 = vmatprep.subr.mxu1 %v1551_v0  ;;  %v596_v62 = vrot.slane %v1718_v60, 4  ;;  %v602_v63 = vmul.f32 %v1718_v60, %v1718_v60  ;;  %1208 = vmatprep.mubr.msk.f32.mxu1 %vm1552_vm0, %v1551_v0  ;;  %v525_v7 = vld [vmem:[#allocation2 + $0x1f8] sm:$0xff]  ;;  %v524_v8 = vld [vmem:[#allocation2 + $0x1f0] sm:$0xff]  ;;  %v621_v36 = vstv %s1632_s9  ;;  %v627_v40 = vstv %s1642_s14 }
 0x3b7   :  { %1310 = vset.pattern.permute.xlu0 %v1553_v42  ;;  %1177 = vmatpush3.msra.mxu1 %v525_v7  ;;  %v523_v11 = vld [vmem:[#allocation2 + $0x1e8] sm:$0xff]  ;;  %v522_v14 = vld [vmem:[#allocation2 + $0x1e0] sm:$0xff]  ;;  %v521_v16 = vld [vmem:[#allocation2 + $0x1d8] sm:$0xff] }
 0x3b8   :  { %v597_v1 = vadd.f32 %v596_v62, %v1718_v60  ;;  %v603_v2 = vrot.slane %v602_v63, 4  ;;  %1178 = vmatprep.subr.mxu1 %v1551_v0  ;;  %v520_v19 = vld [vmem:[#allocation2 + $0x1d0] sm:$0xff]  ;;  %v519_v20 = vld [vmem:[#allocation2 + $0x1c8] sm:$0xff]  ;;  %v518_v21 = vld [vmem:[#allocation2 + $0x1c0] sm:$0xff] }
 0x3b9   :  { %1179 = vmatpush3.msra.mxu1 %v524_v8  ;;  %v517_v22 = vld [vmem:[#allocation2 + $0x1b8] sm:$0xff]  ;;  %v516_v23 = vld [vmem:[#allocation2 + $0x1b0] sm:$0xff]  ;;  %v515_v24 = vld [vmem:[#allocation2 + $0x1a8] sm:$0xff] }
 0x3ba   :  { %v598_v3 = vrot.slane %v597_v1, 2  ;;  %v604_v4 = vadd.f32 %v603_v2, %v602_v63  ;;  %1180 = vmatprep.subr.mxu1 %v1551_v0  ;;  %v514_v25 = vld [vmem:[#allocation2 + $0x1a0] sm:$0xff]  ;;  %v513_v26 = vld [vmem:[#allocation2 + $0x198] sm:$0xff]  ;;  %v512_v27 = vld [vmem:[#allocation2 + $0x190] sm:$0xff] }
 0x3bb   :  { %1181 = vmatpush3.msra.mxu1 %v523_v11  ;;  %v511_v28 = vld [vmem:[#allocation2 + $0x188] sm:$0xff]  ;;  %v510_v29 = vld [vmem:[#allocation2 + $0x180] sm:$0xff] }
 0x3bc   :  { %v599_v5 = vadd.f32 %v598_v3, %v597_v1  ;;  %v605_v6 = vrot.slane %v604_v4, 2  ;;  %1182 = vmatprep.subr.mxu1 %v1551_v0  ;;  %v633_v46 = vld [vmem:[#allocation9 + $0x2] sm:$0x1] }
 0x3bd   :  { %1183 = vmatpush3.msra.mxu1 %v522_v14 }
 0x3be   :  { %v600_v9 = vrot.slane %v599_v5, 1  ;;  %v606_v10 = vadd.f32 %v605_v6, %v604_v4  ;;  %1184 = vmatprep.subr.mxu1 %v1551_v0 }
 0x3bf   :  { %1185 = vmatpush3.msra.mxu1 %v521_v16 }
 0x3c0   :  { %v601_v12 = vadd.f32 %v600_v9, %v599_v5  ;;  %v607_v13 = vrot.slane %v606_v10, 1  ;;  %1186 = vmatprep.subr.mxu1 %v1551_v0 }
 0x3c1   :  { %1187 = vmatpush3.msra.mxu1 %v520_v19 }
 0x3c2   :  { %v608_v15 = vadd.f32 %v607_v13, %v606_v10  ;;  %1188 = vmatprep.subr.mxu1 %v1551_v0 }
 0x3c3   :  { %1189 = vmatpush3.msra.mxu1 %v519_v20 }
 0x3c4   :  { %v609_v17 = vsel %vm331_vm2, %v601_v12, %v608_v15  ;;  %1190 = vmatprep.subr.mxu1 %v1551_v0 }
 0x3c5   :  { %v610_v18 = vsel %vm333_vm3, %v609_v17, 0.0  ;;  %1191 = vmatpush3.msra.mxu1 %v518_v21 }
 0x3c6   :  { %611 = vadd.xlane.f32.xlu0 %v610_v18  ;;  %1192 = vmatprep.subr.mxu1 %v1551_v0 }
 0x3c7   :  { %1193 = vmatpush3.msra.mxu1 %v517_v22 }
 0x3c8   :  { %1194 = vmatprep.subr.mxu1 %v1551_v0 }
 0x3c9   :  { %1195 = vmatpush3.msra.mxu1 %v516_v23 }
 0x3ca   :  { %1196 = vmatprep.subr.mxu1 %v1551_v0 }
 0x3cb   :  { %1197 = vmatpush3.msra.mxu1 %v515_v24 }
 0x3cc   :  { %1198 = vmatprep.subr.mxu1 %v1551_v0 }
 0x3cd   :  { %1199 = vmatpush3.msra.mxu1 %v514_v25 }
 0x3ce   :  { %1200 = vmatprep.subr.mxu1 %v1551_v0 }
 0x3cf   :  { %1201 = vmatpush3.msra.mxu1 %v513_v26 }
 0x3d0   :  { %1202 = vmatprep.subr.mxu1 %v1551_v0 }
 0x3d1   :  { %1203 = vmatpush3.msra.mxu1 %v512_v27 }
 0x3d2   :  { %1204 = vmatprep.subr.mxu1 %v1551_v0 }
 0x3d3   :  { %1205 = vmatpush3.msra.mxu1 %v511_v28 }
 0x3d4   :  { %1206 = vmatprep.subr.mxu1 %v1551_v0 }
 0x3d5   :  { %1207 = vmatpush3.msra.mxu1 %v510_v29 }
 0x3d6   :  { %1209 = vmatmul.mubr.f32.vlgmr.msra.gmra.mxu1 %v1718_v60 }
 0x44f   :  { %v612_v30 = vpop.xlane.xlu0 %611 }
 0x450   :  { %v613_v31 = vmul.f32 0.001953125, %v612_v30 }
 0x452   :  { %v614_v32 = vmul.f32 %v613_v31, %v613_v31 }
 0x454   :  { %v616_v33 = vrot.slane %v614_v32, 7 }
 0x456   :  { %v618_v34 = vsub.f32 %v613_v31, %v616_v33 }
 0x458   :  { %v619_v35 = vadd.f32 1e-05, %v618_v34 }
 0x45a   :  { %1311 = vrsqrt.f32 %v619_v35 }
 0x467   :  { %v1312_v37 = vpop.eup %1311 }
 0x468   :  { %v622_v38 = vmul.f32 %v1312_v37, %v621_v36 }
 0x46a   :  { %v624_v39 = vrot.slane %v622_v38, 1 }
 0x46c   :  { %v626_v41 = vmul.f32 %v624_v39, %v613_v31  ;;  %1285 = vpush %v624_v39 }
 0x46e   :  { %v628_v43 = vsub.f32 %v627_v40, %v626_v41 }
 0x470   :  { %636 = vperm.xlu0 %1310, %v628_v43  }
 0x496   :  { %v592_v44 = vpop.f32.mrf.mxu1 }
 0x498   :  { %v1210_v45 = vpop.f32.mrf.mxu1 }
 0x49d   :  { %s1286_s17 = spop %1285 }
 0x49e   :  { %v630_v47 = vstv %s1286_s17 }
 0x49f   :  { %v632_v50 = vmul.f32 %v630_v47, %v592_v44 }
 0x4eb   :  { %v637_v48 = vpop.permute.xlu0 %636 }
 0x4ec   :  { %v639_v49 = vmul.f32 %v637_v48, %v633_v46 }
 0x4ee   :  { %v643_v51 = vrot.slane %v639_v49, %v1684_v61 }
 0x4f0   :  { %v644_v52 = vadd.f32 %v643_v51, %v632_v50 }
 0x4f2   :  { %v1749_v53 = vmax.f32 %v644_v52, 0.0 }
 0x4f3   :  { %1536 = dma.done.wait [#allocation3 + $0x4], 2048 }
 0x4f4   :  { %1537 = vsyncadd [#allocation3 + $0x4], 4294965248  ;;  %1211 = vmatprep.subr.mxu0 %v1551_v0  ;;  %v734_v54 = vrot.slane %v1749_v53, 4  ;;  %v740_v55 = vmul.f32 %v1749_v53, %v1749_v53  ;;  %1243 = vmatprep.mubr.msk.f32.mxu0 %vm1552_vm0, %v1551_v0  ;;  %v663_v63 = vld [vmem:[#allocation2 + $0x278] sm:$0xff]  ;;  %v662_v1 = vld [vmem:[#allocation2 + $0x270] sm:$0xff]  ;;  %v759_v29 = vstv %s1634_s10  ;;  %v765_v33 = vstv %s1644_s30 }
 0x4f5   :  { %1313 = vset.pattern.permute.xlu0 %v1553_v42  ;;  %1212 = vmatpush3.msra.mxu0 %v663_v63  ;;  %v661_v4 = vld [vmem:[#allocation2 + $0x268] sm:$0xff]  ;;  %v660_v7 = vld [vmem:[#allocation2 + $0x260] sm:$0xff]  ;;  %v659_v9 = vld [vmem:[#allocation2 + $0x258] sm:$0xff] }
 0x4f6   :  { %v735_v56 = vadd.f32 %v734_v54, %v1749_v53  ;;  %v741_v57 = vrot.slane %v740_v55, 4  ;;  %1213 = vmatprep.subr.mxu0 %v1551_v0  ;;  %v658_v12 = vld [vmem:[#allocation2 + $0x250] sm:$0xff]  ;;  %v657_v13 = vld [vmem:[#allocation2 + $0x248] sm:$0xff]  ;;  %v656_v14 = vld [vmem:[#allocation2 + $0x240] sm:$0xff] }
 0x4f7   :  { %1214 = vmatpush3.msra.mxu0 %v662_v1  ;;  %v655_v15 = vld [vmem:[#allocation2 + $0x238] sm:$0xff]  ;;  %v654_v16 = vld [vmem:[#allocation2 + $0x230] sm:$0xff]  ;;  %v653_v17 = vld [vmem:[#allocation2 + $0x228] sm:$0xff] }
 0x4f8   :  { %v736_v58 = vrot.slane %v735_v56, 2  ;;  %v742_v59 = vadd.f32 %v741_v57, %v740_v55  ;;  %1215 = vmatprep.subr.mxu0 %v1551_v0  ;;  %v652_v18 = vld [vmem:[#allocation2 + $0x220] sm:$0xff]  ;;  %v651_v19 = vld [vmem:[#allocation2 + $0x218] sm:$0xff]  ;;  %v650_v20 = vld [vmem:[#allocation2 + $0x210] sm:$0xff] }
 0x4f9   :  { %1216 = vmatpush3.msra.mxu0 %v661_v4  ;;  %v649_v21 = vld [vmem:[#allocation2 + $0x208] sm:$0xff]  ;;  %v648_v22 = vld [vmem:[#allocation2 + $0x200] sm:$0xff] }
 0x4fa   :  { %v737_v60 = vadd.f32 %v736_v58, %v735_v56  ;;  %v743_v62 = vrot.slane %v742_v59, 2  ;;  %1217 = vmatprep.subr.mxu0 %v1551_v0  ;;  %v771_v38 = vld [vmem:[#allocation9 + $0x3] sm:$0x1] }
 0x4fb   :  { %1218 = vmatpush3.msra.mxu0 %v660_v7 }
 0x4fc   :  { %v738_v2 = vrot.slane %v737_v60, 1  ;;  %v744_v3 = vadd.f32 %v743_v62, %v742_v59  ;;  %1219 = vmatprep.subr.mxu0 %v1551_v0 }
 0x4fd   :  { %1220 = vmatpush3.msra.mxu0 %v659_v9 }
 0x4fe   :  { %v739_v5 = vadd.f32 %v738_v2, %v737_v60  ;;  %v745_v6 = vrot.slane %v744_v3, 1  ;;  %1221 = vmatprep.subr.mxu0 %v1551_v0 }
 0x4ff   :  { %1222 = vmatpush3.msra.mxu0 %v658_v12 }
 0x500   :  { %v746_v8 = vadd.f32 %v745_v6, %v744_v3  ;;  %1223 = vmatprep.subr.mxu0 %v1551_v0 }
 0x501   :  { %1224 = vmatpush3.msra.mxu0 %v657_v13 }
 0x502   :  { %v747_v10 = vsel %vm331_vm2, %v739_v5, %v746_v8  ;;  %1225 = vmatprep.subr.mxu0 %v1551_v0 }
 0x503   :  { %v748_v11 = vsel %vm333_vm3, %v747_v10, 0.0  ;;  %1226 = vmatpush3.msra.mxu0 %v656_v14 }
 0x504   :  { %749 = vadd.xlane.f32.xlu0 %v748_v11  ;;  %1227 = vmatprep.subr.mxu0 %v1551_v0 }
 0x505   :  { %1228 = vmatpush3.msra.mxu0 %v655_v15 }
 0x506   :  { %1229 = vmatprep.subr.mxu0 %v1551_v0 }
 0x507   :  { %1230 = vmatpush3.msra.mxu0 %v654_v16 }
 0x508   :  { %1231 = vmatprep.subr.mxu0 %v1551_v0 }
 0x509   :  { %1232 = vmatpush3.msra.mxu0 %v653_v17 }
 0x50a   :  { %1233 = vmatprep.subr.mxu0 %v1551_v0 }
 0x50b   :  { %1234 = vmatpush3.msra.mxu0 %v652_v18 }
 0x50c   :  { %1235 = vmatprep.subr.mxu0 %v1551_v0 }
 0x50d   :  { %1236 = vmatpush3.msra.mxu0 %v651_v19 }
 0x50e   :  { %1237 = vmatprep.subr.mxu0 %v1551_v0 }
 0x50f   :  { %1238 = vmatpush3.msra.mxu0 %v650_v20 }
 0x510   :  { %1239 = vmatprep.subr.mxu0 %v1551_v0 }
 0x511   :  { %1240 = vmatpush3.msra.mxu0 %v649_v21 }
 0x512   :  { %1241 = vmatprep.subr.mxu0 %v1551_v0 }
 0x513   :  { %1242 = vmatpush3.msra.mxu0 %v648_v22 }
 0x514   :  { %1244 = vmatmul.mubr.f32.vlgmr.msra.gmra.mxu0 %v1749_v53 }
 0x58d   :  { %v750_v23 = vpop.xlane.xlu0 %749 }
 0x58e   :  { %v751_v24 = vmul.f32 0.001953125, %v750_v23 }
 0x590   :  { %v752_v25 = vmul.f32 %v751_v24, %v751_v24 }
 0x592   :  { %v754_v26 = vrot.slane %v752_v25, 7 }
 0x594   :  { %v756_v27 = vsub.f32 %v751_v24, %v754_v26 }
 0x596   :  { %v757_v28 = vadd.f32 1e-05, %v756_v27 }
 0x598   :  { %1314 = vrsqrt.f32 %v757_v28 }
 0x5a5   :  { %v1315_v30 = vpop.eup %1314 }
 0x5a6   :  { %v760_v31 = vmul.f32 %v1315_v30, %v759_v29 }
 0x5a8   :  { %v762_v32 = vrot.slane %v760_v31, 1 }
 0x5aa   :  { %v764_v34 = vmul.f32 %v762_v32, %v751_v24  ;;  %1287 = vpush %v762_v32 }
 0x5ac   :  { %v766_v35 = vsub.f32 %v765_v33, %v764_v34 }
 0x5ae   :  { %774 = vperm.xlu0 %1313, %v766_v35  }
 0x5d4   :  { %v730_v36 = vpop.f32.mrf.mxu0 }
 0x5d6   :  { %v1245_v37 = vpop.f32.mrf.mxu0 }
 0x5db   :  { %s1288_s18 = spop %1287 }
 0x5dc   :  { %v768_v39 = vstv %s1288_s18 }
 0x5dd   :  { %v770_v43 = vmul.f32 %v768_v39, %v730_v36 }
 0x629   :  { %v775_v40 = vpop.permute.xlu0 %774 }
 0x62a   :  { %v777_v41 = vmul.f32 %v775_v40, %v771_v38 }
 0x62c   :  { %v781_v44 = vrot.slane %v777_v41, %v1684_v61 }
 0x62e   :  { %v782_v45 = vadd.f32 %v781_v44, %v770_v43 }
 0x630   :  { %v1780_v46 = vmax.f32 %v782_v45, 0.0 }
 0x631   :  { %1538 = dma.done.wait [#allocation3 + $0x5], 2048 }
 0x632   :  { %1539 = vsyncadd [#allocation3 + $0x5], 4294965248  ;;  %1246 = vmatprep.subr.mxu1 %v1551_v0  ;;  %v872_v47 = vrot.slane %v1780_v46, 4  ;;  %v878_v48 = vmul.f32 %v1780_v46, %v1780_v46  ;;  %1278 = vmatprep.mubr.msk.f32.mxu1 %vm1552_vm0, %v1551_v0  ;;  %v801_v55 = vld [vmem:[#allocation2 + $0x2f8] sm:$0xff]  ;;  %v800_v56 = vld [vmem:[#allocation2 + $0x2f0] sm:$0xff]  ;;  %v897_v21 = vstv %s1636_s11  ;;  %v903_v25 = vstv %s1646_s7  ;;  %s1554_s20 = smov [#allocation11]  }
 0x633   :  { %1316 = vset.pattern.permute.xlu0 %v1553_v42  ;;  %1247 = vmatpush3.msra.mxu1 %v801_v55  ;;  %v799_v59 = vld [vmem:[#allocation2 + $0x2e8] sm:$0xff]  ;;  %v798_v42 = vld [vmem:[#allocation2 + $0x2e0] sm:$0xff]  ;;  %v797_v1 = vld [vmem:[#allocation2 + $0x2d8] sm:$0xff]  ;;  %s935_s21 = sshll.u32 %s1554_s20, 4  ;;  %vm927_vm4 = vcmask 130048   ;;  %s936_s21 = int_to_ptr.vmem [resolvable:$true] %s935_s21 }
 0x634   :  { %v873_v49 = vadd.f32 %v872_v47, %v1780_v46  ;;  %v879_v50 = vrot.slane %v878_v48, 4  ;;  %1248 = vmatprep.subr.mxu1 %v1551_v0  ;;  %v796_v4 = vld [vmem:[#allocation2 + $0x2d0] sm:$0xff]  ;;  %v795_v5 = vld [vmem:[#allocation2 + $0x2c8] sm:$0xff]  ;;  %v794_v6 = vld [vmem:[#allocation2 + $0x2c0] sm:$0xff]  ;;  %s1502_s22 = scalar_lea.vmem %s936_s21, 128  ;;  %p1507_p13 = scmp.lt.s32.totalorder %s936_s21, %s936_s21 }
 0x635   :  { %1249 = vmatpush3.msra.mxu1 %v800_v56  ;;  %v793_v7 = vld [vmem:[#allocation2 + $0x2b8] sm:$0xff]  ;;  %v792_v8 = vld [vmem:[#allocation2 + $0x2b0] sm:$0xff]  ;;  %v791_v9 = vld [vmem:[#allocation2 + $0x2a8] sm:$0xff]  ;;  %p1503_p12 = scmp.ne.s32.totalorder %s936_s21, %s1502_s22  ;;  %p1508_p0 = scmp.lt.s32.totalorder %s1502_s22, %s1502_s22 }
 0x636   :  { %v874_v51 = vrot.slane %v873_v49, 2  ;;  %v880_v52 = vadd.f32 %v879_v50, %v878_v48  ;;  %1250 = vmatprep.subr.mxu1 %v1551_v0  ;;  %v790_v10 = vld [vmem:[#allocation2 + $0x2a0] sm:$0xff]  ;;  %v789_v11 = vld [vmem:[#allocation2 + $0x298] sm:$0xff]  ;;  %v788_v12 = vld [vmem:[#allocation2 + $0x290] sm:$0xff] }
 0x637   :  { %1251 = vmatpush3.msra.mxu1 %v799_v59  ;;  %v787_v13 = vld [vmem:[#allocation2 + $0x288] sm:$0xff]  ;;  %v786_v14 = vld [vmem:[#allocation2 + $0x280] sm:$0xff]  ;;  %p1509_p1 = por %p1508_p0, %p1507_p13 }
 0x638   :  { %v875_v53 = vadd.f32 %v874_v51, %v873_v49  ;;  %v881_v54 = vrot.slane %v880_v52, 2  ;;  %1252 = vmatprep.subr.mxu1 %v1551_v0  ;;  %v909_v29 = vld [vmem:[#allocation9 + $0x4] sm:$0x1]  ;;  %v998_v35 = vld [vmem:[#allocation9 + $0x6] ss:$0 sm:$0xff] }
 0x639   :  { %1253 = vmatpush3.msra.mxu1 %v798_v42  ;;  %p1510_p2 = pnand %p1509_p1, %p1503_p12 }
 0x63a   :  { %v876_v57 = vrot.slane %v875_v53, 1  ;;  %v882_v58 = vadd.f32 %v881_v54, %v880_v52  ;;  %1254 = vmatprep.subr.mxu1 %v1551_v0 }
 0x63b   :  { %1255 = vmatpush3.msra.mxu1 %v797_v1 }
 0x63c   :  { %v877_v60 = vadd.f32 %v876_v57, %v875_v53  ;;  %v883_v62 = vrot.slane %v882_v58, 1  ;;  %1256 = vmatprep.subr.mxu1 %v1551_v0 }
 0x63d   :  { %1257 = vmatpush3.msra.mxu1 %v796_v4 }
 0x63e   :  { %v884_v63 = vadd.f32 %v883_v62, %v882_v58  ;;  %1258 = vmatprep.subr.mxu1 %v1551_v0 }
 0x63f   :  { %1259 = vmatpush3.msra.mxu1 %v795_v5 }
 0x640   :  { %v885_v2 = vsel %vm331_vm2, %v877_v60, %v884_v63  ;;  %1260 = vmatprep.subr.mxu1 %v1551_v0 }
 0x641   :  { %v886_v3 = vsel %vm333_vm3, %v885_v2, 0.0  ;;  %1261 = vmatpush3.msra.mxu1 %v794_v6 }
 0x642   :  { %887 = vadd.xlane.f32.xlu0 %v886_v3  ;;  %1262 = vmatprep.subr.mxu1 %v1551_v0 }
 0x643   :  { %1263 = vmatpush3.msra.mxu1 %v793_v7 }
 0x644   :  { %1264 = vmatprep.subr.mxu1 %v1551_v0 }
 0x645   :  { %1265 = vmatpush3.msra.mxu1 %v792_v8 }
 0x646   :  { %1266 = vmatprep.subr.mxu1 %v1551_v0 }
 0x647   :  { %1267 = vmatpush3.msra.mxu1 %v791_v9 }
 0x648   :  { %1268 = vmatprep.subr.mxu1 %v1551_v0 }
 0x649   :  { %1269 = vmatpush3.msra.mxu1 %v790_v10 }
 0x64a   :  { %1270 = vmatprep.subr.mxu1 %v1551_v0 }
 0x64b   :  { %1271 = vmatpush3.msra.mxu1 %v789_v11 }
 0x64c   :  { %1272 = vmatprep.subr.mxu1 %v1551_v0 }
 0x64d   :  { %1273 = vmatpush3.msra.mxu1 %v788_v12 }
 0x64e   :  { %1274 = vmatprep.subr.mxu1 %v1551_v0 }
 0x64f   :  { %1275 = vmatpush3.msra.mxu1 %v787_v13 }
 0x650   :  { %1276 = vmatprep.subr.mxu1 %v1551_v0 }
 0x651   :  { %1277 = vmatpush3.msra.mxu1 %v786_v14 }
 0x652   :  { %1279 = vmatmul.mubr.f32.vlgmr.msra.gmra.mxu1 %v1780_v46 }
 0x6cb   :  { %v888_v15 = vpop.xlane.xlu0 %887 }
 0x6cc   :  { %v889_v16 = vmul.f32 0.001953125, %v888_v15 }
 0x6ce   :  { %v890_v17 = vmul.f32 %v889_v16, %v889_v16 }
 0x6d0   :  { %v892_v18 = vrot.slane %v890_v17, 7 }
 0x6d2   :  { %v894_v19 = vsub.f32 %v889_v16, %v892_v18 }
 0x6d4   :  { %v895_v20 = vadd.f32 1e-05, %v894_v19 }
 0x6d6   :  { %1317 = vrsqrt.f32 %v895_v20 }
 0x6e3   :  { %v1318_v22 = vpop.eup %1317 }
 0x6e4   :  { %v898_v23 = vmul.f32 %v1318_v22, %v897_v21 }
 0x6e6   :  { %v900_v24 = vrot.slane %v898_v23, 1 }
 0x6e8   :  { %v902_v26 = vmul.f32 %v900_v24, %v889_v16  ;;  %1289 = vpush %v900_v24 }
 0x6ea   :  { %v904_v27 = vsub.f32 %v903_v25, %v902_v26 }
 0x6ec   :  { %912 = vperm.xlu0 %1316, %v904_v27  }
 0x712   :  { %v868_v0 = vpop.f32.mrf.mxu1 }
 0x714   :  { %v1280_v28 = vpop.f32.mrf.mxu1 }
 0x719   :  { %s1290_s19 = spop %1289 }
 0x71a   :  { %v906_v30 = vstv %s1290_s19 }
 0x71b   :  { %v908_v33 = vmul.f32 %v906_v30, %v868_v0 }
 0x767   :  { %v913_v31 = vpop.permute.xlu0 %912 }
 0x768   :  { %v915_v32 = vmul.f32 %v913_v31, %v909_v29 }
 0x76a   :  { %v919_v34 = vrot.slane %v915_v32, %v1684_v61 }
 0x76c   :  { %v920_v36 = vadd.f32 %v919_v34, %v908_v33 }
 0x76e   :  { %v926_v37 = vadd.f32 %v998_v35, %v920_v36 }
 0x770   :  { %928 = vst.msk [vmem:[#allocation11] sm:$0xff] %vm927_vm4, %v926_v37 }
 0x771   :  { %1513 = shalt.err (!%p1510_p2)
}
 0x772   :  { %938 = dma.vmem_to_hbm [thread:$0]  %s936_s21, 128, %s1818_s4, [#allocation6]  }
 0x773   :  { %1540 = dma.done.wait [#allocation6], 128  }
 0x774   :  { %1541 = vsyncadd [#allocation6], 4294967168 }
 0x775   :  { %942 = vsyncpa [#allocation5], 1 }
 0x776   :  { %943 = vsyncpa [#allocation10], 1 }
 0x777   :  { %944 = vsyncpa [#allocation6], 1 }
 0x778   :  { %945 = vsyncpa [#allocation7], 1 }
 0x779   :  { %946 = vsyncmov [#allocation3] }
 0x77c   :  { %s947_s25 = vpop.sfrf %946 }
 0x77d   :  { %p999_p3 = scmp.ne.s32.totalorder %s947_s25, 0 }
 0x77f   :  { %951 = shalt.err (%p999_p3)  }
 0x780   :  { %953 = vsyncmov [#allocation3 + $0x1] }
 0x783   :  { %s954_s0 = vpop.sfrf %953 }
 0x784   :  { %p1000_p4 = scmp.ne.s32.totalorder %s954_s0, 0 }
 0x786   :  { %958 = shalt.err (%p1000_p4)  }
 0x787   :  { %960 = vsyncmov [#allocation3 + $0x2] }
 0x78a   :  { %s961_s26 = vpop.sfrf %960 }
 0x78b   :  { %p1001_p5 = scmp.ne.s32.totalorder %s961_s26, 0 }
 0x78d   :  { %965 = shalt.err (%p1001_p5)  }
 0x78e   :  { %967 = vsyncmov [#allocation3 + $0x3] }
 0x791   :  { %s968_s4 = vpop.sfrf %967 }
 0x792   :  { %p1002_p6 = scmp.ne.s32.totalorder %s968_s4, 0 }
 0x794   :  { %972 = shalt.err (%p1002_p6)  }
 0x795   :  { %974 = vsyncmov [#allocation3 + $0x4] }
 0x798   :  { %s975_s1 = vpop.sfrf %974 }
 0x799   :  { %p1003_p7 = scmp.ne.s32.totalorder %s975_s1, 0 }
 0x79b   :  { %979 = shalt.err (%p1003_p7)  }
 0x79c   :  { %981 = vsyncmov [#allocation3 + $0x5] }
 0x79f   :  { %s982_s27 = vpop.sfrf %981 }
 0x7a0   :  { %p1004_p8 = scmp.ne.s32.totalorder %s982_s27, 0 }
 0x7a2   :  { %986 = shalt.err (%p1004_p8)  }

</bundles_post_ra>
